<compile_context>
chip_gen: v5e
topology: v5e:2x2
jax: 0.10.0
libtpu: 0.0.40
codegen_flags: <defaults>
</compile_context>

<pallas_src>
import functools

import jax
import jax.numpy as jnp
from jax.experimental import pallas as pl
from jax.experimental.pallas import tpu as pltpu

_EPS = 1e-5


def _round_up(x, m):
    return ((x + m - 1) // m) * m


def _conformer_conv_kernel(
    x_ref,       # (1, Tt, Dp) input time-tile for this batch element
    halo_ref,    # (1, 1, 2*hs, Dp) halo rows (aligned: hs per side, hs % 8 == 0)
    pvec_ref,    # (8, Dp) packed per-channel params (row order: see wrapper)
    w1a_ref,     # (Dp, Dp) bf16 pointwise conv 1, value half (transposed)
    w1b_ref,     # (Dp, Dp) bf16 pointwise conv 1, gate half (transposed)
    wdw_ref,     # (K, Dp) f32 depthwise conv weights (tap x channel)
    w2_ref,      # (Dp, Dp) bf16 pointwise conv 2 (transposed)
    o_ref,       # (1, Tt, Dp) output tile
    u_sc,        # VMEM scratch (Tt + 2*hs, Dp) f32: GLU output incl. halo
    *,
    seq_len,     # real (unpadded) T
    t_tile,      # Tt
    pad,         # (K - 1) // 2
    hs,          # halo rows per side (multiple of 8, >= pad)
    d_actual,    # real (unpadded) D
    time_padded, # bool: True if the padded time extent exceeds seq_len
):
    t = pl.program_id(1)
    K = wdw_ref.shape[0]
    text = t_tile + 2 * hs

    x_tile = x_ref[0].astype(jnp.float32)                        # (Tt, Dp)
    halo = halo_ref[0, 0].astype(jnp.float32)                    # (2*hs, Dp)
    # hs and Tt are multiples of 8 -> the concatenate is sublane-group aligned.
    x_ext = jnp.concatenate([halo[:hs], x_tile, halo[hs:]], axis=0)  # (Text, Dp)

    pvec = pvec_ref[...]                                          # (8, Dp) f32
    ln_g, ln_b = pvec[0:1, :], pvec[1:2, :]
    b1a, b1b = pvec[2:3, :], pvec[3:4, :]
    bn_scale, bn_shift = pvec[4:5, :], pvec[5:6, :]
    b2 = pvec[6:7, :]

    # ---- LayerNorm over the real D channels (padded channels are zero) ----
    inv_d = jnp.float32(1.0 / d_actual)
    mu = jnp.sum(x_ext, axis=-1, keepdims=True) * inv_d
    ex2 = jnp.sum(x_ext * x_ext, axis=-1, keepdims=True) * inv_d
    var = jnp.maximum(ex2 - mu * mu, 0.0)
    xn = (x_ext - mu) * jax.lax.rsqrt(var + _EPS)
    xn = xn * ln_g + ln_b                                         # pad lanes -> 0

    # ---- Pointwise conv 1 (split into value/gate halves) + GLU ----
    xn_b = xn.astype(jnp.bfloat16)
    a = jnp.dot(xn_b, w1a_ref[...], preferred_element_type=jnp.float32) + b1a
    g = jnp.dot(xn_b, w1b_ref[...], preferred_element_type=jnp.float32) + b1b
    u = a * jax.nn.sigmoid(g)                                     # (Text, Dp)

    # ---- Zero rows outside the valid time range (depthwise 'SAME' padding) ----
    # Only boundary tiles need the mask; interior tiles skip the iota/compares.
    if pad == 0 and not time_padded:
        u_sc[...] = u
    else:
        tile_start = t * t_tile
        needs_mask = jnp.logical_or(tile_start < pad,
                                    tile_start + t_tile + pad > seq_len)

        @pl.when(needs_mask)
        def _():
            gidx = (tile_start - hs
                    + jax.lax.broadcasted_iota(jnp.int32, (text, 1), 0))
            valid = jnp.logical_and(gidx >= 0, gidx < seq_len)
            u_sc[...] = jnp.where(valid, u, 0.0)

        @pl.when(jnp.logical_not(needs_mask))
        def _():
            u_sc[...] = u

    # ---- Depthwise conv along time ('SAME', odd K, no bias) ----
    acc = jnp.zeros((t_tile, x_tile.shape[-1]), jnp.float32)
    wdw = wdw_ref[...]
    for k in range(K):                                            # static unroll
        acc = acc + u_sc[pl.ds(hs - pad + k, t_tile), :] * wdw[k:k + 1, :]

    # ---- BatchNorm1d (eval) folded into affine, then Swish ----
    y = acc * bn_scale + bn_shift
    y = y * jax.nn.sigmoid(y)

    # ---- Pointwise conv 2 ----
    out = jnp.dot(y.astype(jnp.bfloat16), w2_ref[...],
                  preferred_element_type=jnp.float32) + b2

    # Dropout (eval) = identity.
    o_ref[0] = out.astype(o_ref.dtype)


def _pick_vmem_limit():
    """Generation-aware scoped-VMEM limit (v7x has only 64 MiB/TC)."""
    cap = None
    try:
        cap = pltpu.get_tpu_info().vmem_capacity_bytes
    except Exception:
        cap = None
    if cap is not None and cap <= 64 * 1024 * 1024:
        return 48 * 1024 * 1024   # v7x-like: leave headroom below 64 MiB/TC
    return 64 * 1024 * 1024       # v5e / v6e: 128 MiB physical VMEM


def conformer_conv_module(x, params, *, t_tile=256):
    """x: (B, T, D) -> (B, T, D).  params: dict of PyTorch-shaped weights."""
    B, T, D = x.shape
    K = params["w_dw"].shape[-1]
    assert (K - 1) % 2 == 0, "kernel_size must be odd for 'SAME' padding"
    pad = (K - 1) // 2

    # Lane/sublane-dense padded sizes.
    Dp = _round_up(D, 128)
    Tt = max(8, min(_round_up(t_tile, 8), _round_up(T, 8)))
    Tt = max(Tt, _round_up(pad, 8))       # halo comes from one adjacent tile
    nt = pl.cdiv(T, Tt)
    # v7x megacore has 2 TensorCores: try to give the grid >= 2 steps.
    if B * nt < 2 and T > 8:
        Tt = max(8, _round_up(pl.cdiv(T, 2), 8), _round_up(pad, 8))
        nt = pl.cdiv(T, Tt)
    Tp = nt * Tt
    hs = max(8, _round_up(pad, 8))        # aligned halo rows per side
    text = Tt + 2 * hs

    f32 = jnp.float32

    # ---- Weight prep (plain-JAX glue, tiny tensors) ----
    w1 = params["w1"][:, :, 0]                                    # (2D, D)
    def _pad2(m):
        return jnp.pad(m, ((0, Dp - D), (0, Dp - D))) if Dp != D else m
    w1a = _pad2(w1[:D].T).astype(jnp.bfloat16)                    # value half
    w1b = _pad2(w1[D:].T).astype(jnp.bfloat16)                    # gate half
    w2 = _pad2(params["w2"][:, :, 0].T).astype(jnp.bfloat16)
    wdw = params["w_dw"][:, 0, :].T.astype(f32)                   # (K, D)
    if Dp != D:
        wdw = jnp.pad(wdw, ((0, 0), (0, Dp - D)))

    bn_scale = params["bn_gamma"] * jax.lax.rsqrt(params["bn_var"] + _EPS)
    bn_shift = params["bn_beta"] - params["bn_mean"] * bn_scale
    padD = lambda v: jnp.pad(v.astype(f32), (0, Dp - D))
    pvec = jnp.stack([
        padD(params["ln_gamma"]), padD(params["ln_beta"]),
        padD(params["b1"][:D]), padD(params["b1"][D:]),
        padD(bn_scale), padD(bn_shift),
        padD(params["b2"]), jnp.zeros((Dp,), f32),
    ])                                                            # (8, Dp)

    # ---- Input prep: pad only when needed (skip HBM round trips otherwise) ----
    if Tp == T and Dp == D:
        x_p = x
    else:
        x_p = jnp.pad(x, ((0, 0), (0, Tp - T), (0, Dp - D)))      # (B, Tp, Dp)

    # Small per-tile halo tensor built from static slices (no full-x gather):
    # rows [0, hs-pad) zero | [hs-pad, hs) prev-tile tail |
    # rows [hs, hs+pad) next-tile head | [hs+pad, 2*hs) zero.
    x_r = x_p.reshape(B, nt, Tt, Dp)
    if pad > 0:
        zside = jnp.zeros((B, 1, pad, Dp), x.dtype)
        prev = jnp.concatenate([zside, x_r[:, :-1, Tt - pad:, :]], axis=1)
        nxt = jnp.concatenate([x_r[:, 1:, :pad, :], zside], axis=1)
    else:
        prev = jnp.zeros((B, nt, 0, Dp), x.dtype)
        nxt = jnp.zeros((B, nt, 0, Dp), x.dtype)
    zfill = jnp.zeros((B, nt, hs - pad, Dp), x.dtype)
    halo = jnp.concatenate([zfill, prev, nxt, zfill], axis=2)     # (B,nt,2*hs,Dp)

    kernel = functools.partial(
        _conformer_conv_kernel,
        seq_len=T, t_tile=Tt, pad=pad, hs=hs, d_actual=D,
        time_padded=(Tp > T))

    vmem_limit = _pick_vmem_limit()

    def run(single_buffer_weights):
        # Grid-constant operands: single-buffer them to halve their VMEM
        # footprint (index_map is constant, double buffering is pure waste).
        wkw = ({"pipeline_mode": pl.Buffered(1)}
               if single_buffer_weights else {})

        def const(shape):
            return pl.BlockSpec(shape, lambda b, t: tuple(0 for _ in shape),
                                **wkw)

        return pl.pallas_call(
            kernel,
            out_shape=jax.ShapeDtypeStruct((B, Tp, Dp), x.dtype),
            grid_spec=pltpu.PrefetchScalarGridSpec(
                num_scalar_prefetch=0,
                grid=(B, nt),
                in_specs=[
                    pl.BlockSpec((1, Tt, Dp), lambda b, t: (b, t, 0)),       # x
                    pl.BlockSpec((1, 1, 2 * hs, Dp),
                                 lambda b, t: (b, t, 0, 0)),                 # halo
                    const((8, Dp)),        # packed per-channel params
                    const((Dp, Dp)),       # w1a (bf16)
                    const((Dp, Dp)),       # w1b (bf16)
                    const((K, Dp)),        # depthwise weights
                    const((Dp, Dp)),       # w2 (bf16)
                ],
                out_specs=pl.BlockSpec((1, Tt, Dp), lambda b, t: (b, t, 0)),
                scratch_shapes=[pltpu.VMEM((text, Dp), jnp.float32)],
            ),
            compiler_params=pltpu.CompilerParams(
                dimension_semantics=("parallel", "parallel"),
                vmem_limit_bytes=vmem_limit,
            ),
        )(x_p, halo, pvec, w1a, w1b, wdw, w2)

    try:
        out = run(True)
    except Exception:
        # pl.Buffered(1) not supported by this JAX build: fall back to the
        # default (double-buffered) pipeline for the constant operands.
        out = run(False)

    if Tp == T and Dp == D:
        return out
    return out[:, :T, :D]


def _reference(x, params):
    """Pure-JAX f32 reference mirroring the PyTorch eval-mode forward."""
    B, T, D = x.shape
    K = params["w_dw"].shape[-1]
    pad = (K - 1) // 2
    mu = jnp.mean(x, axis=-1, keepdims=True)
    var = jnp.mean(jnp.square(x - mu), axis=-1, keepdims=True)
    xn = (x - mu) / jnp.sqrt(var + _EPS) * params["ln_gamma"] + params["ln_beta"]
    h = jnp.einsum("btd,od->bto", xn, params["w1"][:, :, 0]) + params["b1"]
    a, g = h[..., :D], h[..., D:]
    u = a * jax.nn.sigmoid(g)                                    # (B, T, D)
    up = jnp.pad(u, ((0, 0), (pad, pad), (0, 0)))
    acc = jnp.zeros((B, T, D), jnp.float32)
    for k in range(K):
        acc = acc + up[:, k:k + T, :] * params["w_dw"][:, 0, k]
    y = (acc - params["bn_mean"]) / jnp.sqrt(params["bn_var"] + _EPS)
    y = y * params["bn_gamma"] + params["bn_beta"]
    y = y * jax.nn.sigmoid(y)
    out = jnp.einsum("btd,od->bto", y, params["w2"][:, :, 0]) + params["b2"]
    return out


def _init_params(key, D, K):
    ks = jax.random.split(key, 10)
    scale = 0.1
    return {
        "ln_gamma": jax.random.normal(ks[0], (D,), jnp.float32) * scale + 1.0,
        "ln_beta":  jax.random.normal(ks[1], (D,), jnp.float32) * scale,
        "w1":       jax.random.normal(ks[2], (2 * D, D, 1), jnp.float32) * scale,
        "b1":       jax.random.normal(ks[3], (2 * D,), jnp.float32) * scale,
        "w_dw":     jax.random.normal(ks[4], (D, 1, K), jnp.float32) * scale,
        "bn_gamma": jax.random.normal(ks[5], (D,), jnp.float32) * scale + 1.0,
        "bn_beta":  jax.random.normal(ks[6], (D,), jnp.float32) * scale,
        "bn_mean":  jax.random.normal(ks[7], (D,), jnp.float32) * scale,
        "bn_var":   jnp.abs(jax.random.normal(ks[8], (D,), jnp.float32)) * scale + 1.0,
        "w2":       jax.random.normal(ks[9], (D, D, 1), jnp.float32) * scale,
        "b2":       jnp.zeros((D,), jnp.float32),
    }


if __name__ == "__main__":
    B, T, D, K = 2, 16, 32, 7   # batch, time, in_channels, kernel_size (odd)
    key = jax.random.PRNGKey(0)
    kx, kp = jax.random.split(key)
    x = jax.random.normal(kx, (B, T, D), jnp.float32)
    params = _init_params(kp, D, K)

    # t_tile=8 -> grid (B, 2): exercises the time-tiled + aligned-halo path.
    out = conformer_conv_module(x, params, t_tile=8)
    out = jax.block_until_ready(out)

    ref = jax.block_until_ready(_reference(x, params))
    assert out.shape == (B, T, D)
    # bf16 MXU matmuls (f32 accumulation) widen tolerance vs. pure f32.
    assert jnp.allclose(out, ref, atol=3e-2, rtol=3e-2), "mismatch vs reference"

    print("KERNEL_OK")
</pallas_src>

<mosaic_0001>
module attributes {stable_mosaic.version = 11 : i64} {
  func.func @_conformer_conv_kernel(%arg0: i32, %arg1: i32, %arg2: memref<1x8x128xf32, #tpu.memory_space<vmem>>, %arg3: memref<1x1x16x128xf32, #tpu.memory_space<vmem>>, %arg4: memref<8x128xf32, #tpu.memory_space<vmem>>, %arg5: memref<128x128xbf16, #tpu.memory_space<vmem>>, %arg6: memref<128x128xbf16, #tpu.memory_space<vmem>>, %arg7: memref<7x128xf32, #tpu.memory_space<vmem>>, %arg8: memref<128x128xbf16, #tpu.memory_space<vmem>>, %arg9: memref<1x8x128xf32, #tpu.memory_space<vmem>>, %arg10: memref<24x128xf32, #tpu.memory_space<vmem>>) attributes {dimension_semantics = [#tpu.dimension_semantics<parallel>, #tpu.dimension_semantics<parallel>], iteration_bounds = array<i64: 2, 2>, scalar_prefetch = 0 : i64, scratch_operands = 1 : i64, tpu.core_type = #tpu.core_type<tc>, window_params = [{transform_indices = @transform_0, window_bounds = array<i64: 1, 8, 128>}, {transform_indices = @transform_1, window_bounds = array<i64: 1, 1, 16, 128>}, {pipeline_mode = #tpu.pipeline_mode<synchronous>, transform_indices = @transform_2, window_bounds = array<i64: 8, 128>}, {pipeline_mode = #tpu.pipeline_mode<synchronous>, transform_indices = @transform_3, window_bounds = array<i64: 128, 128>}, {pipeline_mode = #tpu.pipeline_mode<synchronous>, transform_indices = @transform_4, window_bounds = array<i64: 128, 128>}, {pipeline_mode = #tpu.pipeline_mode<synchronous>, transform_indices = @transform_5, window_bounds = array<i64: 7, 128>}, {pipeline_mode = #tpu.pipeline_mode<synchronous>, transform_indices = @transform_6, window_bounds = array<i64: 128, 128>}, {transform_indices = @transform_7, window_bounds = array<i64: 1, 8, 128>}]} {
    %c0 = arith.constant 0 : index
    %c0_0 = arith.constant 0 : index
    %c0_1 = arith.constant 0 : index
    %0 = vector.load %arg2[%c0, %c0_0, %c0_1] : memref<1x8x128xf32, #tpu.memory_space<vmem>>, vector<1x8x128xf32>
    %1 = vector.shape_cast %0 : vector<1x8x128xf32> to vector<8x128xf32>
    %c0_2 = arith.constant 0 : index
    %c0_3 = arith.constant 0 : index
    %c0_4 = arith.constant 0 : index
    %c0_5 = arith.constant 0 : index
    %2 = vector.load %arg3[%c0_2, %c0_3, %c0_4, %c0_5] : memref<1x1x16x128xf32, #tpu.memory_space<vmem>>, vector<1x1x16x128xf32>
    %3 = vector.shape_cast %2 : vector<1x1x16x128xf32> to vector<16x128xf32>
    %4 = vector.extract_strided_slice %3 {offsets = [0, 0], sizes = [8, 128], strides = [1, 1]} : vector<16x128xf32> to vector<8x128xf32>
    %5 = vector.extract_strided_slice %3 {offsets = [8, 0], sizes = [8, 128], strides = [1, 1]} : vector<16x128xf32> to vector<8x128xf32>
    %6 = tpu.concatenate %4, %1, %5 in 0 : vector<8x128xf32>, vector<8x128xf32>, vector<8x128xf32> -> vector<24x128xf32>
    %c0_6 = arith.constant 0 : index
    %c0_7 = arith.constant 0 : index
    %7 = vector.load %arg4[%c0_6, %c0_7] : memref<8x128xf32, #tpu.memory_space<vmem>>, vector<8x128xf32>
    %8 = vector.extract_strided_slice %7 {offsets = [0, 0], sizes = [1, 128], strides = [1, 1]} : vector<8x128xf32> to vector<1x128xf32>
    %9 = vector.extract_strided_slice %7 {offsets = [1, 0], sizes = [1, 128], strides = [1, 1]} : vector<8x128xf32> to vector<1x128xf32>
    %10 = vector.extract_strided_slice %7 {offsets = [2, 0], sizes = [1, 128], strides = [1, 1]} : vector<8x128xf32> to vector<1x128xf32>
    %11 = vector.extract_strided_slice %7 {offsets = [3, 0], sizes = [1, 128], strides = [1, 1]} : vector<8x128xf32> to vector<1x128xf32>
    %12 = vector.extract_strided_slice %7 {offsets = [4, 0], sizes = [1, 128], strides = [1, 1]} : vector<8x128xf32> to vector<1x128xf32>
    %13 = vector.extract_strided_slice %7 {offsets = [5, 0], sizes = [1, 128], strides = [1, 1]} : vector<8x128xf32> to vector<1x128xf32>
    %14 = vector.extract_strided_slice %7 {offsets = [6, 0], sizes = [1, 128], strides = [1, 1]} : vector<8x128xf32> to vector<1x128xf32>
    %cst = arith.constant dense<0.000000e+00> : vector<24xf32>
    %15 = vector.multi_reduction <add>, %6, %cst [1] : vector<24x128xf32> to vector<24xf32>
    %16 = vector.shape_cast %15 : vector<24xf32> to vector<24x1xf32>
    %cst_8 = arith.constant 3.125000e-02 : f32
    %17 = vector.broadcast %cst_8 : f32 to vector<24x1xf32>
    %18 = arith.mulf %16, %17 : vector<24x1xf32>
    %19 = arith.mulf %6, %6 : vector<24x128xf32>
    %cst_9 = arith.constant dense<0.000000e+00> : vector<24xf32>
    %20 = vector.multi_reduction <add>, %19, %cst_9 [1] : vector<24x128xf32> to vector<24xf32>
    %21 = vector.shape_cast %20 : vector<24xf32> to vector<24x1xf32>
    %cst_10 = arith.constant 3.125000e-02 : f32
    %22 = vector.broadcast %cst_10 : f32 to vector<24x1xf32>
    %23 = arith.mulf %21, %22 : vector<24x1xf32>
    %24 = arith.mulf %18, %18 : vector<24x1xf32>
    %25 = arith.subf %23, %24 : vector<24x1xf32>
    %cst_11 = arith.constant 0.000000e+00 : f32
    %26 = vector.broadcast %cst_11 : f32 to vector<24x1xf32>
    %27 = arith.maximumf %25, %26 : vector<24x1xf32>
    %28 = vector.broadcast %18 : vector<24x1xf32> to vector<24x128xf32>
    %29 = arith.subf %6, %28 : vector<24x128xf32>
    %cst_12 = arith.constant 9.99999974E-6 : f32
    %30 = vector.broadcast %cst_12 : f32 to vector<24x1xf32>
    %31 = arith.addf %27, %30 : vector<24x1xf32>
    %32 = math.rsqrt %31 : vector<24x1xf32>
    %33 = vector.broadcast %32 : vector<24x1xf32> to vector<24x128xf32>
    %34 = arith.mulf %29, %33 : vector<24x128xf32>
    %35 = vector.broadcast %8 : vector<1x128xf32> to vector<24x128xf32>
    %36 = arith.mulf %34, %35 : vector<24x128xf32>
    %37 = vector.broadcast %9 : vector<1x128xf32> to vector<24x128xf32>
    %38 = arith.addf %36, %37 : vector<24x128xf32>
    %39 = arith.truncf %38 : vector<24x128xf32> to vector<24x128xbf16>
    %c0_13 = arith.constant 0 : index
    %c0_14 = arith.constant 0 : index
    %40 = vector.load %arg5[%c0_13, %c0_14] : memref<128x128xbf16, #tpu.memory_space<vmem>>, vector<128x128xbf16>
    %cst_15 = arith.constant dense<0.000000e+00> : vector<24x128xf32>
    %41 = tpu.matmul %39, %40, %cst_15 {dimension_numbers = #tpu.dot_dimension_numbers<[1], [0], [0], [1], [0, 0, 1, 1], [], []>} : vector<24x128xbf16>, vector<128x128xbf16>, vector<24x128xf32> -> vector<24x128xf32>
    %42 = vector.broadcast %10 : vector<1x128xf32> to vector<24x128xf32>
    %43 = arith.addf %41, %42 : vector<24x128xf32>
    %c0_16 = arith.constant 0 : index
    %c0_17 = arith.constant 0 : index
    %44 = vector.load %arg6[%c0_16, %c0_17] : memref<128x128xbf16, #tpu.memory_space<vmem>>, vector<128x128xbf16>
    %cst_18 = arith.constant dense<0.000000e+00> : vector<24x128xf32>
    %45 = tpu.matmul %39, %44, %cst_18 {dimension_numbers = #tpu.dot_dimension_numbers<[1], [0], [0], [1], [0, 0, 1, 1], [], []>} : vector<24x128xbf16>, vector<128x128xbf16>, vector<24x128xf32> -> vector<24x128xf32>
    %46 = vector.broadcast %11 : vector<1x128xf32> to vector<24x128xf32>
    %47 = arith.addf %45, %46 : vector<24x128xf32>
    %48 = arith.negf %47 : vector<24x128xf32>
    %49 = math.exp %48 : vector<24x128xf32>
    %cst_19 = arith.constant 1.000000e+00 : f32
    %50 = vector.broadcast %cst_19 : f32 to vector<24x128xf32>
    %51 = arith.addf %50, %49 : vector<24x128xf32>
    %52 = arith.divf %50, %51 : vector<24x128xf32>
    %53 = arith.mulf %43, %52 : vector<24x128xf32>
    %c8_i32 = arith.constant 8 : i32
    %54 = arith.muli %arg1, %c8_i32 : i32
    %c3_i32 = arith.constant 3 : i32
    %55 = arith.cmpi slt, %54, %c3_i32 : i32
    %c8_i32_20 = arith.constant 8 : i32
    %56 = arith.addi %54, %c8_i32_20 : i32
    %c3_i32_21 = arith.constant 3 : i32
    %57 = arith.addi %56, %c3_i32_21 : i32
    %c16_i32 = arith.constant 16 : i32
    %58 = arith.cmpi sgt, %57, %c16_i32 : i32
    %59 = arith.ori %55, %58 : i1
    %60 = arith.extui %59 : i1 to i32
    %c0_i32 = arith.constant 0 : i32
    %61 = arith.cmpi ne, %60, %c0_i32 : i32
    scf.if %61 {
      %c8_i32_40 = arith.constant 8 : i32
      %120 = arith.subi %54, %c8_i32_40 : i32
      %121 = tpu.iota {dimensions = array<i32: 0>} : vector<24x1xi32>
      %122 = vector.broadcast %120 : i32 to vector<24x1xi32>
      %123 = arith.addi %122, %121 : vector<24x1xi32>
      %c0_i32_41 = arith.constant 0 : i32
      %124 = vector.broadcast %c0_i32_41 : i32 to vector<24x1xi32>
      %125 = arith.cmpi sge, %123, %124 : vector<24x1xi32>
      %c16_i32_42 = arith.constant 16 : i32
      %126 = vector.broadcast %c16_i32_42 : i32 to vector<24x1xi32>
      %127 = arith.cmpi slt, %123, %126 : vector<24x1xi32>
      %128 = arith.andi %125, %127 : vector<24x1xi1>
      %cst_43 = arith.constant 0.000000e+00 : f32
      %129 = vector.shape_cast %128 : vector<24x1xi1> to vector<24x1xi1>
      %130 = vector.broadcast %129 : vector<24x1xi1> to vector<24x128xi1>
      %131 = vector.broadcast %cst_43 : f32 to vector<24x128xf32>
      %132 = arith.select %130, %53, %131 : vector<24x128xi1>, vector<24x128xf32>
      %c0_44 = arith.constant 0 : index
      %c0_45 = arith.constant 0 : index
      %133 = vector.load %arg10[%c0_44, %c0_45] : memref<24x128xf32, #tpu.memory_space<vmem>>, vector<24x128xf32>
      tpu.vector_store %arg10[%c0_44, %c0_45], %132 {strides = array<i32>} : memref<24x128xf32, #tpu.memory_space<vmem>>, vector<24x128xf32>,
    } else {
    }
    %true = arith.constant true
    %62 = arith.xori %59, %true : i1
    %63 = arith.extui %62 : i1 to i32
    %c0_i32_22 = arith.constant 0 : i32
    %64 = arith.cmpi ne, %63, %c0_i32_22 : i32
    scf.if %64 {
      %c0_40 = arith.constant 0 : index
      %c0_41 = arith.constant 0 : index
      %120 = vector.load %arg10[%c0_40, %c0_41] : memref<24x128xf32, #tpu.memory_space<vmem>>, vector<24x128xf32>
      tpu.vector_store %arg10[%c0_40, %c0_41], %53 {strides = array<i32>} : memref<24x128xf32, #tpu.memory_space<vmem>>, vector<24x128xf32>,
    } else {
    }
    %cst_23 = arith.constant 0.000000e+00 : f32
    %65 = vector.broadcast %cst_23 : f32 to vector<8x128xf32>
    %c0_24 = arith.constant 0 : index
    %c0_25 = arith.constant 0 : index
    %66 = vector.load %arg7[%c0_24, %c0_25] : memref<7x128xf32, #tpu.memory_space<vmem>>, vector<7x128xf32>
    %c5 = arith.constant 5 : index
    %c0_26 = arith.constant 0 : index
    %67 = vector.load %arg10[%c5, %c0_26] : memref<24x128xf32, #tpu.memory_space<vmem>>, vector<8x128xf32>
    %68 = vector.extract_strided_slice %66 {offsets = [0, 0], sizes = [1, 128], strides = [1, 1]} : vector<7x128xf32> to vector<1x128xf32>
    %69 = vector.broadcast %68 : vector<1x128xf32> to vector<8x128xf32>
    %70 = arith.mulf %67, %69 : vector<8x128xf32>
    %71 = arith.addf %65, %70 : vector<8x128xf32>
    %c6 = arith.constant 6 : index
    %c0_27 = arith.constant 0 : index
    %72 = vector.load %arg10[%c6, %c0_27] : memref<24x128xf32, #tpu.memory_space<vmem>>, vector<8x128xf32>
    %73 = vector.extract_strided_slice %66 {offsets = [1, 0], sizes = [1, 128], strides = [1, 1]} : vector<7x128xf32> to vector<1x128xf32>
    %74 = vector.broadcast %73 : vector<1x128xf32> to vector<8x128xf32>
    %75 = arith.mulf %72, %74 : vector<8x128xf32>
    %76 = arith.addf %71, %75 : vector<8x128xf32>
    %c7 = arith.constant 7 : index
    %c0_28 = arith.constant 0 : index
    %77 = vector.load %arg10[%c7, %c0_28] : memref<24x128xf32, #tpu.memory_space<vmem>>, vector<8x128xf32>
    %78 = vector.extract_strided_slice %66 {offsets = [2, 0], sizes = [1, 128], strides = [1, 1]} : vector<7x128xf32> to vector<1x128xf32>
    %79 = vector.broadcast %78 : vector<1x128xf32> to vector<8x128xf32>
    %80 = arith.mulf %77, %79 : vector<8x128xf32>
    %81 = arith.addf %76, %80 : vector<8x128xf32>
    %c8 = arith.constant 8 : index
    %c0_29 = arith.constant 0 : index
    %82 = vector.load %arg10[%c8, %c0_29] : memref<24x128xf32, #tpu.memory_space<vmem>>, vector<8x128xf32>
    %83 = vector.extract_strided_slice %66 {offsets = [3, 0], sizes = [1, 128], strides = [1, 1]} : vector<7x128xf32> to vector<1x128xf32>
    %84 = vector.broadcast %83 : vector<1x128xf32> to vector<8x128xf32>
    %85 = arith.mulf %82, %84 : vector<8x128xf32>
    %86 = arith.addf %81, %85 : vector<8x128xf32>
    %c9 = arith.constant 9 : index
    %c0_30 = arith.constant 0 : index
    %87 = vector.load %arg10[%c9, %c0_30] : memref<24x128xf32, #tpu.memory_space<vmem>>, vector<8x128xf32>
    %88 = vector.extract_strided_slice %66 {offsets = [4, 0], sizes = [1, 128], strides = [1, 1]} : vector<7x128xf32> to vector<1x128xf32>
    %89 = vector.broadcast %88 : vector<1x128xf32> to vector<8x128xf32>
    %90 = arith.mulf %87, %89 : vector<8x128xf32>
    %91 = arith.addf %86, %90 : vector<8x128xf32>
    %c10 = arith.constant 10 : index
    %c0_31 = arith.constant 0 : index
    %92 = vector.load %arg10[%c10, %c0_31] : memref<24x128xf32, #tpu.memory_space<vmem>>, vector<8x128xf32>
    %93 = vector.extract_strided_slice %66 {offsets = [5, 0], sizes = [1, 128], strides = [1, 1]} : vector<7x128xf32> to vector<1x128xf32>
    %94 = vector.broadcast %93 : vector<1x128xf32> to vector<8x128xf32>
    %95 = arith.mulf %92, %94 : vector<8x128xf32>
    %96 = arith.addf %91, %95 : vector<8x128xf32>
    %c11 = arith.constant 11 : index
    %c0_32 = arith.constant 0 : index
    %97 = vector.load %arg10[%c11, %c0_32] : memref<24x128xf32, #tpu.memory_space<vmem>>, vector<8x128xf32>
    %98 = vector.extract_strided_slice %66 {offsets = [6, 0], sizes = [1, 128], strides = [1, 1]} : vector<7x128xf32> to vector<1x128xf32>
    %99 = vector.broadcast %98 : vector<1x128xf32> to vector<8x128xf32>
    %100 = arith.mulf %97, %99 : vector<8x128xf32>
    %101 = arith.addf %96, %100 : vector<8x128xf32>
    %102 = vector.broadcast %12 : vector<1x128xf32> to vector<8x128xf32>
    %103 = arith.mulf %101, %102 : vector<8x128xf32>
    %104 = vector.broadcast %13 : vector<1x128xf32> to vector<8x128xf32>
    %105 = arith.addf %103, %104 : vector<8x128xf32>
    %106 = arith.negf %105 : vector<8x128xf32>
    %107 = math.exp %106 : vector<8x128xf32>
    %cst_33 = arith.constant 1.000000e+00 : f32
    %108 = vector.broadcast %cst_33 : f32 to vector<8x128xf32>
    %109 = arith.addf %108, %107 : vector<8x128xf32>
    %110 = arith.divf %108, %109 : vector<8x128xf32>
    %111 = arith.mulf %105, %110 : vector<8x128xf32>
    %112 = arith.truncf %111 : vector<8x128xf32> to vector<8x128xbf16>
    %c0_34 = arith.constant 0 : index
    %c0_35 = arith.constant 0 : index
    %113 = vector.load %arg8[%c0_34, %c0_35] : memref<128x128xbf16, #tpu.memory_space<vmem>>, vector<128x128xbf16>
    %cst_36 = arith.constant dense<0.000000e+00> : vector<8x128xf32>
    %114 = tpu.matmul %112, %113, %cst_36 {dimension_numbers = #tpu.dot_dimension_numbers<[1], [0], [0], [1], [0, 0, 1, 1], [], []>} : vector<8x128xbf16>, vector<128x128xbf16>, vector<8x128xf32> -> vector<8x128xf32>
    %115 = vector.broadcast %14 : vector<1x128xf32> to vector<8x128xf32>
    %116 = arith.addf %114, %115 : vector<8x128xf32>
    %c0_37 = arith.constant 0 : index
    %c0_38 = arith.constant 0 : index
    %c0_39 = arith.constant 0 : index
    %117 = vector.load %arg9[%c0_37, %c0_38, %c0_39] : memref<1x8x128xf32, #tpu.memory_space<vmem>>, vector<1x8x128xf32>
    %118 = vector.shape_cast %117 : vector<1x8x128xf32> to vector<8x128xf32>
    %119 = vector.shape_cast %116 : vector<8x128xf32> to vector<1x8x128xf32>
    tpu.vector_store %arg9[%c0_37, %c0_38, %c0_39], %119 {strides = array<i32>} : memref<1x8x128xf32, #tpu.memory_space<vmem>>, vector<1x8x128xf32>,
    return
  }
  func.func @transform_0(%arg0: i32, %arg1: i32) -> (i32, i32, i32) {
    %c0_i32 = arith.constant 0 : i32
    %c0_i32_0 = arith.constant 0 : i32
    return %arg0, %arg1, %c0_i32 : i32, i32, i32
  }
  func.func @transform_1(%arg0: i32, %arg1: i32) -> (i32, i32, i32, i32) {
    %c0_i32 = arith.constant 0 : i32
    %c0_i32_0 = arith.constant 0 : i32
    %c0_i32_1 = arith.constant 0 : i32
    return %arg0, %arg1, %c0_i32, %c0_i32_0 : i32, i32, i32, i32
  }
  func.func @transform_2(%arg0: i32, %arg1: i32) -> (i32, i32) {
    %c0_i32 = arith.constant 0 : i32
    %c0_i32_0 = arith.constant 0 : i32
    %c0_i32_1 = arith.constant 0 : i32
    return %c0_i32, %c0_i32_0 : i32, i32
  }
  func.func @transform_3(%arg0: i32, %arg1: i32) -> (i32, i32) {
    %c0_i32 = arith.constant 0 : i32
    %c0_i32_0 = arith.constant 0 : i32
    %c0_i32_1 = arith.constant 0 : i32
    return %c0_i32, %c0_i32_0 : i32, i32
  }
  func.func @transform_4(%arg0: i32, %arg1: i32) -> (i32, i32) {
    %c0_i32 = arith.constant 0 : i32
    %c0_i32_0 = arith.constant 0 : i32
    %c0_i32_1 = arith.constant 0 : i32
    return %c0_i32, %c0_i32_0 : i32, i32
  }
  func.func @transform_5(%arg0: i32, %arg1: i32) -> (i32, i32) {
    %c0_i32 = arith.constant 0 : i32
    %c0_i32_0 = arith.constant 0 : i32
    %c0_i32_1 = arith.constant 0 : i32
    return %c0_i32, %c0_i32_0 : i32, i32
  }
  func.func @transform_6(%arg0: i32, %arg1: i32) -> (i32, i32) {
    %c0_i32 = arith.constant 0 : i32
    %c0_i32_0 = arith.constant 0 : i32
    %c0_i32_1 = arith.constant 0 : i32
    return %c0_i32, %c0_i32_0 : i32, i32
  }
  func.func @transform_7(%arg0: i32, %arg1: i32) -> (i32, i32, i32) {
    %c0_i32 = arith.constant 0 : i32
    %c0_i32_0 = arith.constant 0 : i32
    return %arg0, %arg1, %c0_i32 : i32, i32, i32
  }
}

module attributes {stable_mosaic.version = 11 : i64} {
  func.func @_conformer_conv_kernel(%arg0: i32, %arg1: i32, %arg2: memref<1x8x128xf32, #tpu.memory_space<vmem>>, %arg3: memref<1x1x16x128xf32, #tpu.memory_space<vmem>>, %arg4: memref<8x128xf32, #tpu.memory_space<vmem>>, %arg5: memref<128x128xbf16, #tpu.memory_space<vmem>>, %arg6: memref<128x128xbf16, #tpu.memory_space<vmem>>, %arg7: memref<7x128xf32, #tpu.memory_space<vmem>>, %arg8: memref<128x128xbf16, #tpu.memory_space<vmem>>, %arg9: memref<1x8x128xf32, #tpu.memory_space<vmem>>, %arg10: memref<24x128xf32, #tpu.memory_space<vmem>>) attributes {dimension_semantics = [#tpu.dimension_semantics<parallel>, #tpu.dimension_semantics<parallel>], iteration_bounds = array<i64: 2, 2>, scalar_prefetch = 0 : i64, scratch_operands = 1 : i64, tpu.core_type = #tpu.core_type<tc>, window_params = [{transform_indices = @transform_0, window_bounds = array<i64: 1, 8, 128>}, {transform_indices = @transform_1, window_bounds = array<i64: 1, 1, 16, 128>}, {pipeline_mode = #tpu.pipeline_mode<synchronous>, transform_indices = @transform_2, window_bounds = array<i64: 8, 128>}, {pipeline_mode = #tpu.pipeline_mode<synchronous>, transform_indices = @transform_3, window_bounds = array<i64: 128, 128>}, {pipeline_mode = #tpu.pipeline_mode<synchronous>, transform_indices = @transform_4, window_bounds = array<i64: 128, 128>}, {pipeline_mode = #tpu.pipeline_mode<synchronous>, transform_indices = @transform_5, window_bounds = array<i64: 7, 128>}, {pipeline_mode = #tpu.pipeline_mode<synchronous>, transform_indices = @transform_6, window_bounds = array<i64: 128, 128>}, {transform_indices = @transform_7, window_bounds = array<i64: 1, 8, 128>}]} {
    %c0 = arith.constant 0 : index
    %c0_0 = arith.constant 0 : index
    %c0_1 = arith.constant 0 : index
    %0 = vector.load %arg2[%c0, %c0_0, %c0_1] : memref<1x8x128xf32, #tpu.memory_space<vmem>>, vector<1x8x128xf32>
    %1 = vector.shape_cast %0 : vector<1x8x128xf32> to vector<8x128xf32>
    %c0_2 = arith.constant 0 : index
    %c0_3 = arith.constant 0 : index
    %c0_4 = arith.constant 0 : index
    %c0_5 = arith.constant 0 : index
    %2 = vector.load %arg3[%c0_2, %c0_3, %c0_4, %c0_5] : memref<1x1x16x128xf32, #tpu.memory_space<vmem>>, vector<1x1x16x128xf32>
    %3 = vector.shape_cast %2 : vector<1x1x16x128xf32> to vector<16x128xf32>
    %4 = vector.extract_strided_slice %3 {offsets = [0, 0], sizes = [8, 128], strides = [1, 1]} : vector<16x128xf32> to vector<8x128xf32>
    %5 = vector.extract_strided_slice %3 {offsets = [8, 0], sizes = [8, 128], strides = [1, 1]} : vector<16x128xf32> to vector<8x128xf32>
    %6 = tpu.concatenate %4, %1, %5 in 0 : vector<8x128xf32>, vector<8x128xf32>, vector<8x128xf32> -> vector<24x128xf32>
    %c0_6 = arith.constant 0 : index
    %c0_7 = arith.constant 0 : index
    %7 = vector.load %arg4[%c0_6, %c0_7] : memref<8x128xf32, #tpu.memory_space<vmem>>, vector<8x128xf32>
    %8 = vector.extract_strided_slice %7 {offsets = [0, 0], sizes = [1, 128], strides = [1, 1]} : vector<8x128xf32> to vector<1x128xf32>
    %9 = vector.extract_strided_slice %7 {offsets = [1, 0], sizes = [1, 128], strides = [1, 1]} : vector<8x128xf32> to vector<1x128xf32>
    %10 = vector.extract_strided_slice %7 {offsets = [2, 0], sizes = [1, 128], strides = [1, 1]} : vector<8x128xf32> to vector<1x128xf32>
    %11 = vector.extract_strided_slice %7 {offsets = [3, 0], sizes = [1, 128], strides = [1, 1]} : vector<8x128xf32> to vector<1x128xf32>
    %12 = vector.extract_strided_slice %7 {offsets = [4, 0], sizes = [1, 128], strides = [1, 1]} : vector<8x128xf32> to vector<1x128xf32>
    %13 = vector.extract_strided_slice %7 {offsets = [5, 0], sizes = [1, 128], strides = [1, 1]} : vector<8x128xf32> to vector<1x128xf32>
    %14 = vector.extract_strided_slice %7 {offsets = [6, 0], sizes = [1, 128], strides = [1, 1]} : vector<8x128xf32> to vector<1x128xf32>
    %cst = arith.constant dense<0.000000e+00> : vector<24xf32>
    %15 = vector.multi_reduction <add>, %6, %cst [1] : vector<24x128xf32> to vector<24xf32>
    %16 = vector.shape_cast %15 : vector<24xf32> to vector<24x1xf32>
    %cst_8 = arith.constant 3.125000e-02 : f32
    %17 = vector.broadcast %cst_8 : f32 to vector<24x1xf32>
    %18 = arith.mulf %16, %17 : vector<24x1xf32>
    %19 = arith.mulf %6, %6 : vector<24x128xf32>
    %cst_9 = arith.constant dense<0.000000e+00> : vector<24xf32>
    %20 = vector.multi_reduction <add>, %19, %cst_9 [1] : vector<24x128xf32> to vector<24xf32>
    %21 = vector.shape_cast %20 : vector<24xf32> to vector<24x1xf32>
    %cst_10 = arith.constant 3.125000e-02 : f32
    %22 = vector.broadcast %cst_10 : f32 to vector<24x1xf32>
    %23 = arith.mulf %21, %22 : vector<24x1xf32>
    %24 = arith.mulf %18, %18 : vector<24x1xf32>
    %25 = arith.subf %23, %24 : vector<24x1xf32>
    %cst_11 = arith.constant 0.000000e+00 : f32
    %26 = vector.broadcast %cst_11 : f32 to vector<24x1xf32>
    %27 = arith.maximumf %25, %26 : vector<24x1xf32>
    %28 = vector.broadcast %18 : vector<24x1xf32> to vector<24x128xf32>
    %29 = arith.subf %6, %28 : vector<24x128xf32>
    %cst_12 = arith.constant 9.99999974E-6 : f32
    %30 = vector.broadcast %cst_12 : f32 to vector<24x1xf32>
    %31 = arith.addf %27, %30 : vector<24x1xf32>
    %32 = math.rsqrt %31 : vector<24x1xf32>
    %33 = vector.broadcast %32 : vector<24x1xf32> to vector<24x128xf32>
    %34 = arith.mulf %29, %33 : vector<24x128xf32>
    %35 = vector.broadcast %8 : vector<1x128xf32> to vector<24x128xf32>
    %36 = arith.mulf %34, %35 : vector<24x128xf32>
    %37 = vector.broadcast %9 : vector<1x128xf32> to vector<24x128xf32>
    %38 = arith.addf %36, %37 : vector<24x128xf32>
    %39 = arith.truncf %38 : vector<24x128xf32> to vector<24x128xbf16>
    %c0_13 = arith.constant 0 : index
    %c0_14 = arith.constant 0 : index
    %40 = vector.load %arg5[%c0_13, %c0_14] : memref<128x128xbf16, #tpu.memory_space<vmem>>, vector<128x128xbf16>
    %cst_15 = arith.constant dense<0.000000e+00> : vector<24x128xf32>
    %41 = tpu.matmul %39, %40, %cst_15 {dimension_numbers = #tpu.dot_dimension_numbers<[1], [0], [0], [1], [0, 0, 1, 1], [], []>} : vector<24x128xbf16>, vector<128x128xbf16>, vector<24x128xf32> -> vector<24x128xf32>
    %42 = vector.broadcast %10 : vector<1x128xf32> to vector<24x128xf32>
    %43 = arith.addf %41, %42 : vector<24x128xf32>
    %c0_16 = arith.constant 0 : index
    %c0_17 = arith.constant 0 : index
    %44 = vector.load %arg6[%c0_16, %c0_17] : memref<128x128xbf16, #tpu.memory_space<vmem>>, vector<128x128xbf16>
    %cst_18 = arith.constant dense<0.000000e+00> : vector<24x128xf32>
    %45 = tpu.matmul %39, %44, %cst_18 {dimension_numbers = #tpu.dot_dimension_numbers<[1], [0], [0], [1], [0, 0, 1, 1], [], []>} : vector<24x128xbf16>, vector<128x128xbf16>, vector<24x128xf32> -> vector<24x128xf32>
    %46 = vector.broadcast %11 : vector<1x128xf32> to vector<24x128xf32>
    %47 = arith.addf %45, %46 : vector<24x128xf32>
    %48 = arith.negf %47 : vector<24x128xf32>
    %49 = math.exp %48 : vector<24x128xf32>
    %cst_19 = arith.constant 1.000000e+00 : f32
    %50 = vector.broadcast %cst_19 : f32 to vector<24x128xf32>
    %51 = arith.addf %50, %49 : vector<24x128xf32>
    %52 = arith.divf %50, %51 : vector<24x128xf32>
    %53 = arith.mulf %43, %52 : vector<24x128xf32>
    %c8_i32 = arith.constant 8 : i32
    %54 = arith.muli %arg1, %c8_i32 : i32
    %c3_i32 = arith.constant 3 : i32
    %55 = arith.cmpi slt, %54, %c3_i32 : i32
    %c8_i32_20 = arith.constant 8 : i32
    %56 = arith.addi %54, %c8_i32_20 : i32
    %c3_i32_21 = arith.constant 3 : i32
    %57 = arith.addi %56, %c3_i32_21 : i32
    %c16_i32 = arith.constant 16 : i32
    %58 = arith.cmpi sgt, %57, %c16_i32 : i32
    %59 = arith.ori %55, %58 : i1
    %60 = arith.extui %59 : i1 to i32
    %c0_i32 = arith.constant 0 : i32
    %61 = arith.cmpi ne, %60, %c0_i32 : i32
    scf.if %61 {
      %c8_i32_40 = arith.constant 8 : i32
      %120 = arith.subi %54, %c8_i32_40 : i32
      %121 = tpu.iota {dimensions = array<i32: 0>} : vector<24x1xi32>
      %122 = vector.broadcast %120 : i32 to vector<24x1xi32>
      %123 = arith.addi %122, %121 : vector<24x1xi32>
      %c0_i32_41 = arith.constant 0 : i32
      %124 = vector.broadcast %c0_i32_41 : i32 to vector<24x1xi32>
      %125 = arith.cmpi sge, %123, %124 : vector<24x1xi32>
      %c16_i32_42 = arith.constant 16 : i32
      %126 = vector.broadcast %c16_i32_42 : i32 to vector<24x1xi32>
      %127 = arith.cmpi slt, %123, %126 : vector<24x1xi32>
      %128 = arith.andi %125, %127 : vector<24x1xi1>
      %cst_43 = arith.constant 0.000000e+00 : f32
      %129 = vector.shape_cast %128 : vector<24x1xi1> to vector<24x1xi1>
      %130 = vector.broadcast %129 : vector<24x1xi1> to vector<24x128xi1>
      %131 = vector.broadcast %cst_43 : f32 to vector<24x128xf32>
      %132 = arith.select %130, %53, %131 : vector<24x128xi1>, vector<24x128xf32>
      %c0_44 = arith.constant 0 : index
      %c0_45 = arith.constant 0 : index
      %133 = vector.load %arg10[%c0_44, %c0_45] : memref<24x128xf32, #tpu.memory_space<vmem>>, vector<24x128xf32>
      tpu.vector_store %arg10[%c0_44, %c0_45], %132 {strides = array<i32>} : memref<24x128xf32, #tpu.memory_space<vmem>>, vector<24x128xf32>,
    } else {
    }
    %true = arith.constant true
    %62 = arith.xori %59, %true : i1
    %63 = arith.extui %62 : i1 to i32
    %c0_i32_22 = arith.constant 0 : i32
    %64 = arith.cmpi ne, %63, %c0_i32_22 : i32
    scf.if %64 {
      %c0_40 = arith.constant 0 : index
      %c0_41 = arith.constant 0 : index
      %120 = vector.load %arg10[%c0_40, %c0_41] : memref<24x128xf32, #tpu.memory_space<vmem>>, vector<24x128xf32>
      tpu.vector_store %arg10[%c0_40, %c0_41], %53 {strides = array<i32>} : memref<24x128xf32, #tpu.memory_space<vmem>>, vector<24x128xf32>,
    } else {
    }
    %cst_23 = arith.constant 0.000000e+00 : f32
    %65 = vector.broadcast %cst_23 : f32 to vector<8x128xf32>
    %c0_24 = arith.constant 0 : index
    %c0_25 = arith.constant 0 : index
    %66 = vector.load %arg7[%c0_24, %c0_25] : memref<7x128xf32, #tpu.memory_space<vmem>>, vector<7x128xf32>
    %c5 = arith.constant 5 : index
    %c0_26 = arith.constant 0 : index
    %67 = vector.load %arg10[%c5, %c0_26] : memref<24x128xf32, #tpu.memory_space<vmem>>, vector<8x128xf32>
    %68 = vector.extract_strided_slice %66 {offsets = [0, 0], sizes = [1, 128], strides = [1, 1]} : vector<7x128xf32> to vector<1x128xf32>
    %69 = vector.broadcast %68 : vector<1x128xf32> to vector<8x128xf32>
    %70 = arith.mulf %67, %69 : vector<8x128xf32>
    %71 = arith.addf %65, %70 : vector<8x128xf32>
    %c6 = arith.constant 6 : index
    %c0_27 = arith.constant 0 : index
    %72 = vector.load %arg10[%c6, %c0_27] : memref<24x128xf32, #tpu.memory_space<vmem>>, vector<8x128xf32>
    %73 = vector.extract_strided_slice %66 {offsets = [1, 0], sizes = [1, 128], strides = [1, 1]} : vector<7x128xf32> to vector<1x128xf32>
    %74 = vector.broadcast %73 : vector<1x128xf32> to vector<8x128xf32>
    %75 = arith.mulf %72, %74 : vector<8x128xf32>
    %76 = arith.addf %71, %75 : vector<8x128xf32>
    %c7 = arith.constant 7 : index
    %c0_28 = arith.constant 0 : index
    %77 = vector.load %arg10[%c7, %c0_28] : memref<24x128xf32, #tpu.memory_space<vmem>>, vector<8x128xf32>
    %78 = vector.extract_strided_slice %66 {offsets = [2, 0], sizes = [1, 128], strides = [1, 1]} : vector<7x128xf32> to vector<1x128xf32>
    %79 = vector.broadcast %78 : vector<1x128xf32> to vector<8x128xf32>
    %80 = arith.mulf %77, %79 : vector<8x128xf32>
    %81 = arith.addf %76, %80 : vector<8x128xf32>
    %c8 = arith.constant 8 : index
    %c0_29 = arith.constant 0 : index
    %82 = vector.load %arg10[%c8, %c0_29] : memref<24x128xf32, #tpu.memory_space<vmem>>, vector<8x128xf32>
    %83 = vector.extract_strided_slice %66 {offsets = [3, 0], sizes = [1, 128], strides = [1, 1]} : vector<7x128xf32> to vector<1x128xf32>
    %84 = vector.broadcast %83 : vector<1x128xf32> to vector<8x128xf32>
    %85 = arith.mulf %82, %84 : vector<8x128xf32>
    %86 = arith.addf %81, %85 : vector<8x128xf32>
    %c9 = arith.constant 9 : index
    %c0_30 = arith.constant 0 : index
    %87 = vector.load %arg10[%c9, %c0_30] : memref<24x128xf32, #tpu.memory_space<vmem>>, vector<8x128xf32>
    %88 = vector.extract_strided_slice %66 {offsets = [4, 0], sizes = [1, 128], strides = [1, 1]} : vector<7x128xf32> to vector<1x128xf32>
    %89 = vector.broadcast %88 : vector<1x128xf32> to vector<8x128xf32>
    %90 = arith.mulf %87, %89 : vector<8x128xf32>
    %91 = arith.addf %86, %90 : vector<8x128xf32>
    %c10 = arith.constant 10 : index
    %c0_31 = arith.constant 0 : index
    %92 = vector.load %arg10[%c10, %c0_31] : memref<24x128xf32, #tpu.memory_space<vmem>>, vector<8x128xf32>
    %93 = vector.extract_strided_slice %66 {offsets = [5, 0], sizes = [1, 128], strides = [1, 1]} : vector<7x128xf32> to vector<1x128xf32>
    %94 = vector.broadcast %93 : vector<1x128xf32> to vector<8x128xf32>
    %95 = arith.mulf %92, %94 : vector<8x128xf32>
    %96 = arith.addf %91, %95 : vector<8x128xf32>
    %c11 = arith.constant 11 : index
    %c0_32 = arith.constant 0 : index
    %97 = vector.load %arg10[%c11, %c0_32] : memref<24x128xf32, #tpu.memory_space<vmem>>, vector<8x128xf32>
    %98 = vector.extract_strided_slice %66 {offsets = [6, 0], sizes = [1, 128], strides = [1, 1]} : vector<7x128xf32> to vector<1x128xf32>
    %99 = vector.broadcast %98 : vector<1x128xf32> to vector<8x128xf32>
    %100 = arith.mulf %97, %99 : vector<8x128xf32>
    %101 = arith.addf %96, %100 : vector<8x128xf32>
    %102 = vector.broadcast %12 : vector<1x128xf32> to vector<8x128xf32>
    %103 = arith.mulf %101, %102 : vector<8x128xf32>
    %104 = vector.broadcast %13 : vector<1x128xf32> to vector<8x128xf32>
    %105 = arith.addf %103, %104 : vector<8x128xf32>
    %106 = arith.negf %105 : vector<8x128xf32>
    %107 = math.exp %106 : vector<8x128xf32>
    %cst_33 = arith.constant 1.000000e+00 : f32
    %108 = vector.broadcast %cst_33 : f32 to vector<8x128xf32>
    %109 = arith.addf %108, %107 : vector<8x128xf32>
    %110 = arith.divf %108, %109 : vector<8x128xf32>
    %111 = arith.mulf %105, %110 : vector<8x128xf32>
    %112 = arith.truncf %111 : vector<8x128xf32> to vector<8x128xbf16>
    %c0_34 = arith.constant 0 : index
    %c0_35 = arith.constant 0 : index
    %113 = vector.load %arg8[%c0_34, %c0_35] : memref<128x128xbf16, #tpu.memory_space<vmem>>, vector<128x128xbf16>
    %cst_36 = arith.constant dense<0.000000e+00> : vector<8x128xf32>
    %114 = tpu.matmul %112, %113, %cst_36 {dimension_numbers = #tpu.dot_dimension_numbers<[1], [0], [0], [1], [0, 0, 1, 1], [], []>} : vector<8x128xbf16>, vector<128x128xbf16>, vector<8x128xf32> -> vector<8x128xf32>
    %115 = vector.broadcast %14 : vector<1x128xf32> to vector<8x128xf32>
    %116 = arith.addf %114, %115 : vector<8x128xf32>
    %c0_37 = arith.constant 0 : index
    %c0_38 = arith.constant 0 : index
    %c0_39 = arith.constant 0 : index
    %117 = vector.load %arg9[%c0_37, %c0_38, %c0_39] : memref<1x8x128xf32, #tpu.memory_space<vmem>>, vector<1x8x128xf32>
    %118 = vector.shape_cast %117 : vector<1x8x128xf32> to vector<8x128xf32>
    %119 = vector.shape_cast %116 : vector<8x128xf32> to vector<1x8x128xf32>
    tpu.vector_store %arg9[%c0_37, %c0_38, %c0_39], %119 {strides = array<i32>} : memref<1x8x128xf32, #tpu.memory_space<vmem>>, vector<1x8x128xf32>,
    return
  }
  func.func @transform_0(%arg0: i32, %arg1: i32) -> (i32, i32, i32) {
    %c0_i32 = arith.constant 0 : i32
    %c0_i32_0 = arith.constant 0 : i32
    return %arg0, %arg1, %c0_i32 : i32, i32, i32
  }
  func.func @transform_1(%arg0: i32, %arg1: i32) -> (i32, i32, i32, i32) {
    %c0_i32 = arith.constant 0 : i32
    %c0_i32_0 = arith.constant 0 : i32
    %c0_i32_1 = arith.constant 0 : i32
    return %arg0, %arg1, %c0_i32, %c0_i32_0 : i32, i32, i32, i32
  }
  func.func @transform_2(%arg0: i32, %arg1: i32) -> (i32, i32) {
    %c0_i32 = arith.constant 0 : i32
    %c0_i32_0 = arith.constant 0 : i32
    %c0_i32_1 = arith.constant 0 : i32
    return %c0_i32, %c0_i32_0 : i32, i32
  }
  func.func @transform_3(%arg0: i32, %arg1: i32) -> (i32, i32) {
    %c0_i32 = arith.constant 0 : i32
    %c0_i32_0 = arith.constant 0 : i32
    %c0_i32_1 = arith.constant 0 : i32
    return %c0_i32, %c0_i32_0 : i32, i32
  }
  func.func @transform_4(%arg0: i32, %arg1: i32) -> (i32, i32) {
    %c0_i32 = arith.constant 0 : i32
    %c0_i32_0 = arith.constant 0 : i32
    %c0_i32_1 = arith.constant 0 : i32
    return %c0_i32, %c0_i32_0 : i32, i32
  }
  func.func @transform_5(%arg0: i32, %arg1: i32) -> (i32, i32) {
    %c0_i32 = arith.constant 0 : i32
    %c0_i32_0 = arith.constant 0 : i32
    %c0_i32_1 = arith.constant 0 : i32
    return %c0_i32, %c0_i32_0 : i32, i32
  }
  func.func @transform_6(%arg0: i32, %arg1: i32) -> (i32, i32) {
    %c0_i32 = arith.constant 0 : i32
    %c0_i32_0 = arith.constant 0 : i32
    %c0_i32_1 = arith.constant 0 : i32
    return %c0_i32, %c0_i32_0 : i32, i32
  }
  func.func @transform_7(%arg0: i32, %arg1: i32) -> (i32, i32, i32) {
    %c0_i32 = arith.constant 0 : i32
    %c0_i32_0 = arith.constant 0 : i32
    return %arg0, %arg1, %c0_i32 : i32, i32, i32
  }
}

</mosaic_0001>

<bundles_post_ra>
// kernel: tpu_custom_call.1
= control target key start
LH: loop header
LB: loop body
LE: loop exit
PB: predicated region body
PF: predicated region fallthrough
CT: control target
= control target key end

     0   :  { %s2080_s0 = inlined_call_operand.hbm [shape: f32[2,16,128], index: 0, kind: input, shape index: {}]   ;;  %s2081_s1 = inlined_call_operand.hbm [shape: f32[2,2,16,128], index: 1, kind: input, shape index: {}]   ;;  %s2082_s2 = inlined_call_operand.hbm [shape: f32[8,128], index: 2, kind: input, shape index: {}]   ;;  %s2083_s3 = inlined_call_operand.hbm [shape: bf16[128,128], index: 3, kind: input, shape index: {}]   ;;  %s2084_s4 = inlined_call_operand.hbm [shape: bf16[128,128], index: 4, kind: input, shape index: {}]   ;;  %s2085_s5 = inlined_call_operand.hbm [shape: f32[7,128], index: 5, kind: input, shape index: {}]   ;;  %s2086_s6 = inlined_call_operand.hbm [shape: bf16[128,128], index: 6, kind: input, shape index: {}]   ;;  %s2087_s7 = inlined_call_operand.hbm [shape: f32[2,16,128], index: 7, kind: output, shape index: {}]  }
   0x1   :  { %2093 = sst [smem:[#allocation28_spill]] %s2080_s0 }
   0x2   :  { %2094 = sst [smem:[#allocation29_spill]] %s2082_s2 }
   0x3   :  { %2095 = sst [smem:[#allocation30_spill]] %s2083_s3 }
   0x4   :  { %2096 = sst [smem:[#allocation31_spill]] %s2084_s4 }
   0x5   :  { %2097 = sst [smem:[#allocation32_spill]] %s2085_s5 }
   0x6   :  { %2098 = sst [smem:[#allocation33_spill]] %s2086_s6 }
   0x7   :  { %12 = vsyncpa [#allocation4], 0 }
   0x8   :  { %14 = vsyncpa [#allocation4 + $0x1], 0 }
   0x9   :  { %15 = vsyncpa [#allocation7], 0 }
   0xa   :  { %17 = vsyncpa [#allocation7 + $0x1], 0 }
   0xb   :  { %18 = vsyncpa [#allocation10], 0 }
   0xc   :  { %19 = vsyncpa [#allocation13], 0 }
   0xd   :  { %20 = vsyncpa [#allocation5], 0 }
   0xe   :  { %22 = vsyncpa [#allocation5 + $0x1], 0  ;;  %s1799_s24 = smov 0   ;;  %s1801_s25 = smov 0  }
   0xf   :  { %s1803_s26 = smov 0   ;;  %s1805_s27 = smov 0  }
  0x10   :  { %s1807_s28 = smov 0   ;;  %s1809_s29 = smov 0  }
  0x11   :  { %s1811_s30 = smov 0   ;;  %s1813_s8 = smov 0  }
  0x12 LB: > { %2099 = sst [smem:[#allocation22_spill]] %s1720_s24  ;;  %s1840_s9 = sadd.s32 4294967295, %s1748_s8   ;;  %s1748_s8 = sphi %s1813_s8, %s28_s8   ;;  %s1744_s30 = sphi %s1811_s30, %s2130_s30   ;;  %s1740_s29 = sphi %s1809_s29, %s2129_s29   ;;  %s1736_s28 = sphi %s1807_s28, %s2128_s28   ;;  %s1732_s27 = sphi %s1805_s27, %s2127_s27   ;;  %s1728_s26 = sphi %s1803_s26, %s2122_s26   ;;  %s1724_s25 = sphi %s1801_s25, %s2126_s25   ;;  %s1720_s24 = sphi %s1799_s24, %s2125_s24  }
  0x13   : > { %2100 = sst [smem:[#allocation23_spill]] %s1728_s26  ;;  %p1102_p0 = scmp.ge.s32.totalorder %s1748_s8, 1 }
  0x14   : > { %p63_p1 = scmp.eq.s32.totalorder %s1840_s9, 0  ;;  %p234_p2 = scmp.lt.s32.totalorder %s1748_s8, 5 }
  0x15   : > { %s2101_s2 = sld [smem:[#allocation29_spill]]  ;;  %s1750_s14 = smov [#allocation8]  }
  0x16   : > { %p1848_p3 = pnand %p1102_p0, %p234_p2  ;;  %s248_s15 = sshll.u32 %s1750_s14, 4  ;;  %s249_s15 = int_to_ptr.vmem [resolvable:$true] %s248_s15 }
  0x17   : > { %s2103_s3 = sld [smem:[#allocation30_spill]]  ;;  %s1751_s20 = smov [#allocation9]  }
  0x18   : > { %p1290_p4 = pneg %p1848_p3  ;;  %s259_s21 = sshll.u32 %s1751_s20, 4  ;;  %s260_s21 = int_to_ptr.vmem [resolvable:$true] %s259_s21 }
  0x19   : > { %s1752_s22 = smov 64   ;;  %s1753_s23 = smov 4  }
  0x1a   : > { %p1859_p5 = pnand %p1290_p4, %p63_p1  ;;  %s2105_s5 = sld [smem:[#allocation32_spill]] }
  0x1b   : > { %s246_s12 = sshll.u32 %s2101_s2, 4  ;;  %s1754_s16 = smov [#allocation12]   ;;  %s247_s12 = int_to_ptr.hbm [resolvable:$true] %s246_s12 }
  0x1c   : > { %1293 = dma.hbm_to_vmem [thread:$0]  (!%p1859_p5), %s247_s12, 128, %s249_s15, [#allocation7]  }
  0x1d   : > { %s257_s18 = sshll.u32 %s2103_s3, 4  ;;  %s288_s17 = sshll.u32 %s1754_s16, 4  ;;  %s258_s18 = int_to_ptr.hbm [resolvable:$true] %s257_s18  ;;  %s289_s17 = int_to_ptr.vmem [resolvable:$true] %s288_s17 }
  0x1e   : > { %1296 = dma.hbm_to_vmem [thread:$0]  (!%p1859_p5), %s258_s18, 1024, %s260_s21, [#allocation10], %s1752_s22, %s1752_s22, %s1753_s23  }
  0x1f   : > { %s2106_s4 = sld [smem:[#allocation31_spill]]  ;;  %s1755_s15 = smov [#allocation11]  }
  0x20   : > { %s286_s14 = sshll.u32 %s2105_s5, 4  ;;  %s273_s18 = sshll.u32 %s1755_s15, 4  ;;  %s287_s14 = int_to_ptr.hbm [resolvable:$true] %s286_s14  ;;  %s274_s18 = int_to_ptr.vmem [resolvable:$true] %s273_s18 }
  0x21   : > { %1302 = dma.hbm_to_vmem [thread:$0]  (!%p1859_p5), %s287_s14, 128, %s289_s17, [#allocation13]  }
  0x22   : > { %s2107_s6 = sld [smem:[#allocation33_spill]]  ;;  %s1756_s2 = smov [#allocation14]  }
  0x23   : > { %s299_s14 = sshll.u32 %s1756_s2, 4  ;;  %s1101_s16 = sadd.s32 4294967294, %s1748_s8   ;;  %s300_s14 = int_to_ptr.vmem [resolvable:$true] %s299_s14 }
  0x24   : > { %s37_s17 = sadd.s32 1, %s1740_s29  ;;  %s40_s20 = sadd.s32 1, %s1744_s30 }
  0x25   : > { %s271_s12 = sshll.u32 %s2106_s4, 4  ;;  %p38_p6 = scmp.ge.s32.totalorder %s37_s17, 2  ;;  %s272_s12 = int_to_ptr.hbm [resolvable:$true] %s271_s12 }
  0x26   : > { %1299 = dma.hbm_to_vmem [thread:$0]  (!%p1859_p5), %s272_s12, 1024, %s274_s18, [#allocation10], %s1752_s22, %s1752_s22, %s1753_s23  }
  0x27   : > { %s49_s15 = sadd.s32 1, %s1728_s26  ;;  %p56_p7 = scmp.ne.s32.totalorder %s1728_s26, %s1724_s25 }
  0x28   : > { %s297_s11 = sshll.u32 %s2107_s6, 4  ;;  %p57_p8 = scmp.eq.s32.totalorder %s1748_s8, 0  ;;  %s298_s11 = int_to_ptr.hbm [resolvable:$true] %s297_s11 }
  0x29   : > { %1305 = dma.hbm_to_vmem [thread:$0]  (!%p1859_p5), %s298_s11, 1024, %s300_s14, [#allocation13], %s1752_s22, %s1752_s22, %s1753_s23  }
  0x2a   : > { %s2132_s17 = smov (%p38_p6, %s37_s17), 0  ;;  %s2134_s20 = smov (!%p38_p6, %s40_s20), %s1744_s30 }
  0x2b   : > { %2108 = sst [smem:[#allocation24_spill]] %s2132_s17  ;;  %s45_s12 = ssub.s32 %s1740_s29, %s2132_s17 }
  0x2c   : > { %p1894_p9 = por %p57_p8, %p56_p7  ;;  %p42_p10 = scmp.ge.s32.totalorder %s2134_s20, 2 }
  0x2d   : > { %p62_p11 = scmp.ne.s32.totalorder %s1724_s25, %s1720_s24  ;;  %p221_p12 = scmp.eq.s32.totalorder %s1840_s9, 3 }
  0x2e   : > { %p227_p13 = scmp.eq.s32.totalorder %s1101_s16, 3  ;;  %s2136_s20 = smov (%p42_p10, %s2134_s20), 0 }
  0x2f   : > { %2110 = sst [smem:[#allocation25_spill]] %s2136_s20  ;;  %p1905_p0 = por %p63_p1, %p62_p11 }
  0x30   : > { %p1909_p2 = por %p221_p12, %p56_p7  ;;  %s44_s18 = ssub.s32 %s1744_s30, %s2136_s20 }
  0x31   : > { %p1915_p4 = por %p227_p13, %p62_p11  ;;  %s46_s10 = sor.u32 %s45_s12, %s44_s18 }
  0x32   : > { %p1322_p5 = scmp.lt.s32.totalorder %s1748_s8, 4  ;;  %p47_p6 = scmp.eq.s32.totalorder %s46_s10, 0 }
  0x33   : > { %s2113_s21 = scalar_select %p1915_p4, 1, 0 }
  0x34   : > { %s313_s11 = sand.u32 1, %s1728_s26   ;;  %s1110_s16 = sshll.u32 %s1744_s30, 1 }
  0x35   : > { %2114 = sst [smem:[#allocation26_spill]] %s2113_s21  ;;  %s1109_s2 = sshll.u32 %s313_s11, 3 }
  0x36   : > { %s1922_s14 = scalar_select %p47_p6, %s1728_s26, %s49_s15  }
  0x37   : > { %s321_s3 = sadd.s32 %s1740_s29, %s1110_s16  ;;  %s317_s4 = scalar_lea.vmem [#allocation3], %s1109_s2 }
  0x38   : > { %2115 = sst [smem:[#allocation27_spill]] %s1922_s14  ;;  %s327_s5 = sshll.u32 %s317_s4, 4  ;;  %s328_s5 = int_to_ptr.vmem [resolvable:$true] %s327_s5 }
  0x39   : > { %s1111_s6 = sshll.u32 %s321_s3, 3  ;;  %s2116_s0 = sld [smem:[#allocation28_spill]] }
  0x3a   : > { %p1931_p7 = pnand %p1322_p5, %p1894_p9  ;;  %s1112_s18 = sshll.u32 %s313_s11, 4 }
  0x3b   : > { %s314_s10 = scalar_lea.sflag [#allocation4], %s313_s11  ;;  %s1113_s4 = sshll.u32 %s1740_s29, 1 }
  0x3c   : > { %s338_s3 = scalar_lea.vmem [#allocation6], %s1112_s18  ;;  %s334_s16 = sand.u32 1, %s1748_s8  }
  0x3d   : > { %s348_s2 = sshll.u32 %s338_s3, 4  ;;  %s1114_s17 = sshll.u32 %s1744_s30, 2  ;;  %s349_s2 = int_to_ptr.vmem [resolvable:$true] %s348_s2 }
  0x3e   : > { %s1757_s24 = smov 128   ;;  %s1758_s11 = smov 8  }
  0x3f   : > { %s323_s21 = scalar_lea.hbm %s2116_s0, %s1111_s6  ;;  %s343_s6 = sadd.s32 %s1114_s17, %s1113_s4 }
  0x40   : > { %s325_s15 = sshll.u32 %s323_s21, 4  ;;  %s1115_s20 = sshll.u32 %s343_s6, 3  ;;  %s326_s15 = int_to_ptr.hbm [resolvable:$true] %s325_s15 }
  0x41   : > { %1309 = dma.hbm_to_vmem [thread:$0]  (!%p1931_p7), %s326_s15, 128, %s328_s5, %s314_s10  }
  0x42   : > { %s345_s14 = scalar_lea.hbm %s2081_s1, %s1115_s20  ;;  %s335_s21 = scalar_lea.sflag [#allocation7], %s334_s16 }
  0x43   : > { %s346_s26 = sshll.u32 %s345_s14, 4  ;;  %360 = sbr.rel (%p1848_p3) target bundleno = 626 (0x272), region = 48  ;;  %s347_s26 = int_to_ptr.hbm [resolvable:$true] %s346_s26 }
  0x44   : > { %1312 = dma.hbm_to_vmem [thread:$0]  (!%p1931_p7), %s347_s26, 256, %s349_s2, %s335_s21, %s1757_s24, %s1757_s24, %s1758_s11  }
  0x45   : > { %s1948_s5 = sand.u32 (!%p1848_p3), 1, %s1724_s25  }
  0x46   : > { %s1117_s15 = sshll.u32 (!%p1848_p3), %s1948_s5, 3  ;;  %s363_s0 = scalar_lea.sflag (!%p1848_p3), [#allocation4], %s1948_s5 }
  0x47   : > { %s366_s14 = scalar_lea.vmem (!%p1848_p3), [#allocation3], %s1117_s15 }
  0x48   : > { %1695 = dma.done.wait (%p1905_p0), %s363_s0, 128  }
  0x49   : > { %1697 = vsyncadd (%p1905_p0), %s363_s0, 4294967168  ;;  %s372_s24 = sand.u32 1, %s1840_s9   ;;  %s1118_s26 = sshll.u32 %s1948_s5, 4 }
  0x4a   : > { %s373_s13 = scalar_lea.sflag [#allocation7], %s372_s24  ;;  %s376_s12 = scalar_lea.vmem [#allocation6], %s1118_s26 }
  0x4b   : > { %1699 = dma.done.wait (%p1905_p0), %s373_s13, 256  }
  0x4c   : > { %1701 = vsyncadd (%p1905_p0), %s373_s13, 4294967040 }
  0x4d   : > { %1703 = dma.done.wait (%p63_p1), [#allocation7], 128  }
  0x4e   : > { %1705 = vsyncadd (%p63_p1), [#allocation7], 4294967168 }
  0x4f   : > { %1707 = dma.done.wait (%p63_p1), [#allocation10], 2048  }
  0x50   : > { %1709 = vsyncadd (%p63_p1), [#allocation10], 4294965248 }
  0x51   : > { %1711 = dma.done.wait (%p63_p1), [#allocation13], 1152  }
  0x52   : > { %1713 = vsyncadd (%p63_p1), [#allocation13], 4294966144  ;;  %v1976_v0 = vld [vmem:[%s376_s12 + $0x8] sm:$0xff]  ;;  %v1978_v1 = vld [vmem:[%s376_s12] sm:$0xff]  ;;  %s2009_s9 = sshll.u32 %s1732_s27, 3  ;;  %s2024_s10 = scalar_lea.vmem [#allocation15], %s1117_s15 }
  0x53   : > { %446 = vadd.xlane.f32.xlu2 %v1976_v0  ;;  %442 = vadd.xlane.f32.xlu0 %v1978_v1  ;;  %v451_v2 = vmul.f32 %v1978_v1, %v1978_v1  ;;  %v1984_v3 = vld [vmem:[%s366_s14] sm:$0xff]  ;;  %v453_v4 = vmul.f32 %v1976_v0, %v1976_v0  ;;  %v1239_v6 = vld [vmem:[#allocation9 + $0x38] sm:$0xff]  ;;  %v1236_v12 = vld [vmem:[#allocation9 + $0x20] sm:$0xff]  ;;  %s749_s22 = sadd.s32 11, %s2009_s9  ;;  %p748_p1 = scmp.lt.s32.totalorder %s2009_s9, 3 }
  0x54   : > { %v452_v5 = vmul.f32 %v1984_v3, %v1984_v3  ;;  %1256 = vmatpush.bf16.msra.mxu3 %v1239_v6  ;;  %586 = vmatpush.bf16.msra.mxu0 %v1239_v6  ;;  %v1247_v7 = vld [vmem:[#allocation11 + $0x38] sm:$0xff]  ;;  %v1238_v8 = vld [vmem:[#allocation9 + $0x30] sm:$0xff]  ;;  %v1237_v10 = vld [vmem:[#allocation9 + $0x28] sm:$0xff]  ;;  %p750_p3 = scmp.gt.s32.totalorder %s749_s22, 16 }
  0x55   : > { %454 = vadd.xlane.f32.xlu1 %v451_v2  ;;  %669 = vmatpush.bf16.msra.mxu1 %v1247_v7  ;;  %v1246_v9 = vld [vmem:[#allocation11 + $0x30] sm:$0xff]  ;;  %v1245_v11 = vld [vmem:[#allocation11 + $0x28] sm:$0xff]  ;;  %v1244_v13 = vld [vmem:[#allocation11 + $0x20] sm:$0xff] }
  0x56   : > { %v1235_v14 = vld [vmem:[#allocation9 + $0x18] sm:$0xff]  ;;  %v1234_v16 = vld [vmem:[#allocation9 + $0x10] sm:$0xff]  ;;  %v1233_v22 = vld [vmem:[#allocation9 + $0x8] sm:$0xff]  ;;  %p2013_p8 = por %p750_p3, %p748_p1 }
  0x57   : > { %v1243_v15 = vld [vmem:[#allocation11 + $0x18] sm:$0xff]  ;;  %v1242_v20 = vld [vmem:[#allocation11 + $0x10] sm:$0xff]  ;;  %v1241_v25 = vld [vmem:[#allocation11 + $0x8] sm:$0xff]  ;;  %s1193_s4 = sadd.s32 (%p2013_p8), 4294967288, %s2009_s9 }
  0x58   : > { %1257 = vmatpush.bf16.msra.mxu3 %v1238_v8  ;;  %587 = vmatpush.bf16.msra.mxu0 %v1238_v8  ;;  %v1232_v27 = vld [vmem:[#allocation9] sm:$0xff]  ;;  %v1999_v61 = vld [vmem:[#allocation8] sm:$0xff] }
  0x59   : > { %670 = vmatpush.bf16.msra.mxu1 %v1246_v9  ;;  %v1240_v30 = vld [vmem:[#allocation11] sm:$0xff]  ;;  %v511_v6 = vperm.slane %v1999_v61, 0 }
  0x5b   : > { %458 = vadd.xlane.f32.xlu2 %v453_v4  ;;  %444 = vadd.xlane.f32.xlu0 %v1984_v3 }
  0x5c   : > { %1258 = vmatpush.bf16.msra.mxu3 %v1237_v10  ;;  %588 = vmatpush.bf16.msra.mxu0 %v1237_v10 }
  0x5d   : > { %456 = vadd.xlane.f32.xlu1 %v452_v5  ;;  %671 = vmatpush.bf16.msra.mxu1 %v1245_v11 }
  0x60   : > { %1259 = vmatpush.bf16.msra.mxu3 %v1236_v12  ;;  %589 = vmatpush.bf16.msra.mxu0 %v1236_v12 }
  0x61   : > { %672 = vmatpush.bf16.msra.mxu1 %v1244_v13  ;;  %v515_v13 = vperm.slane %v1999_v61, 1 }
  0x64   : > { %1260 = vmatpush.bf16.msra.mxu3 %v1235_v14  ;;  %590 = vmatpush.bf16.msra.mxu0 %v1235_v14 }
  0x65   : > { %673 = vmatpush.bf16.msra.mxu1 %v1243_v15 }
  0x68   : > { %1261 = vmatpush.bf16.msra.mxu3 %v1234_v16  ;;  %591 = vmatpush.bf16.msra.mxu0 %v1234_v16 }
  0x69   : > { %674 = vmatpush.bf16.msra.mxu1 %v1242_v20 }
  0x6c   : > { %1262 = vmatpush.bf16.msra.mxu3 %v1233_v22  ;;  %592 = vmatpush.bf16.msra.mxu0 %v1233_v22 }
  0x6d   : > { %675 = vmatpush.bf16.msra.mxu1 %v1241_v25 }
  0x70   : > { %1263 = vmatpush.bf16.msra.mxu3 %v1232_v27  ;;  %593 = vmatpush.bf16.msra.mxu0 %v1232_v27 }
  0x71   : > { %676 = vmatpush.bf16.msra.mxu1 %v1240_v30 }
  0xc6   : > { %v447_v17 = vpop.xlane.xlu2 %446  ;;  %v443_v18 = vpop.xlane.xlu0 %442 }
  0xc7   : > { %v1991_v19 = vmul.f32 0.03125, %v443_v18  ;;  %v1993_v23 = vmul.f32 0.03125, %v447_v17 }
  0xc8   : > { %v455_v21 = vpop.xlane.xlu1 %454 }
  0xc9   : > { %v463_v24 = vmul.f32 %v1991_v19, %v1991_v19  ;;  %v460_v26 = vmul.f32 0.03125, %v455_v21  ;;  %v465_v29 = vmul.f32 %v1993_v23, %v1993_v23  ;;  %v472_v63 = vsub.f32 %v1978_v1, %v1991_v19 }
  0xca   : > { %v474_v5 = vsub.f32 %v1976_v0, %v1993_v23 }
  0xcb   : > { %v466_v28 = vsub.f32 %v460_v26, %v463_v24 }
  0xcd   : > { %v469_v31 = vmax.f32 %v466_v28, 0.0 }
  0xce   : > { %v459_v32 = vpop.xlane.xlu2 %458  ;;  %v445_v33 = vpop.xlane.xlu0 %444 }
  0xcf   : > { %v462_v34 = vmul.f32 0.03125, %v459_v32  ;;  %v449_v35 = vmul.f32 0.03125, %v445_v33  ;;  %v475_v36 = vadd.f32 1e-05, %v469_v31 }
  0xd0   : > { %v457_v37 = vpop.xlane.xlu1 %456 }
  0xd1   : > { %v468_v38 = vsub.f32 %v462_v34, %v465_v29  ;;  %v464_v39 = vmul.f32 %v449_v35, %v449_v35  ;;  %v461_v40 = vmul.f32 0.03125, %v457_v37  ;;  %1402 = vrsqrt.f32 %v475_v36 }
  0xd2   : > { %vm484_vm1 = vweird.f32 %v475_v36  ;;  %v473_v10 = vsub.f32 %v1984_v3, %v449_v35  ;;  %v620_v3 = vperm.slane %v1999_v61, 3 }
  0xd3   : > { %v471_v41 = vmax.f32 %v468_v38, 0.0  ;;  %v467_v42 = vsub.f32 %v461_v40, %v464_v39 }
  0xd5   : > { %v477_v43 = vadd.f32 1e-05, %v471_v41  ;;  %v470_v44 = vmax.f32 %v467_v42, 0.0  ;;  %v537_v42 = vperm.slane %v1999_v61, 2 }
  0xd7   : > { %1404 = vrsqrt.f32 %v477_v43  ;;  %v476_v45 = vadd.f32 1e-05, %v470_v44  ;;  %v1403_v46 = vpop.eup %1402  ;;  %vm504_vm3 = vweird.f32 %v477_v43 }
  0xd8   : > { %v479_v47 = vmul.f32 %v1403_v46, %v475_v36  ;;  %vm485_vm0 = vweird.f32 %v1403_v46 }
  0xd9   : > { %1406 = vrsqrt.f32 %v476_v45  ;;  %vm486_vm2 = vmor %vm484_vm1, %vm485_vm0  ;;  %vm494_vm7 = vweird.f32 %v476_v45 }
  0xda   : > { %v480_v48 = vmul.f32 %v1403_v46, %v479_v47 }
  0xdc   : > { %v481_v50 = vmul.f32 0.5, %v480_v48 }
  0xdd   : > { %v1405_v49 = vpop.eup %1404 }
  0xde   : > { %v499_v51 = vmul.f32 %v1405_v49, %v477_v43  ;;  %v482_v53 = vsub.f32 1.5, %v481_v50  ;;  %vm505_vm4 = vweird.f32 %v1405_v49 }
  0xdf   : > { %v1407_v52 = vpop.eup %1406  ;;  %vm506_vm6 = vmor %vm504_vm3, %vm505_vm4 }
  0xe0   : > { %v500_v54 = vmul.f32 %v1405_v49, %v499_v51  ;;  %v489_v55 = vmul.f32 %v1407_v52, %v476_v45  ;;  %v483_v56 = vmul.f32 %v1403_v46, %v482_v53  ;;  %vm495_vm5 = vweird.f32 %v1407_v52 }
  0xe1   : > { %vm496_vm8 = vmor %vm494_vm7, %vm495_vm5 }
  0xe2   : > { %v501_v57 = vmul.f32 0.5, %v500_v54  ;;  %v490_v58 = vmul.f32 %v1407_v52, %v489_v55  ;;  %v487_v62 = vsel %vm486_vm2, %v1403_v46, %v483_v56 }
  0xe3   : > { %v508_v7 = vmul.f32 %v487_v62, %v472_v63 }
  0xe4   : > { %v502_v59 = vsub.f32 1.5, %v501_v57  ;;  %v491_v60 = vmul.f32 0.5, %v490_v58 }
  0xe5   : > { %v512_v15 = vmul.f32 %v511_v6, %v508_v7 }
  0xe6   : > { %v492_v2 = vsub.f32 1.5, %v491_v60  ;;  %v503_v4 = vmul.f32 %v1405_v49, %v502_v59 }
  0xe7   : > { %v516_v18 = vadd.f32 %v515_v13, %v512_v15 }
  0xe8   : > { %v493_v8 = vmul.f32 %v1407_v52, %v492_v2  ;;  %v507_v9 = vsel %vm506_vm6, %v1405_v49, %v503_v4 }
  0xe9   : > { %v510_v11 = vmul.f32 %v507_v9, %v474_v5 }
  0xea   : > { %v497_v12 = vsel %vm496_vm8, %v1407_v52, %v493_v8 }
  0xeb   : > { %v514_v1 = vmul.f32 %v511_v6, %v510_v11  ;;  %v509_v14 = vmul.f32 %v497_v12, %v473_v10 }
  0xed   : > { %v518_v16 = vadd.f32 %v515_v13, %v514_v1  ;;  %v513_v0 = vmul.f32 %v511_v6, %v509_v14 }
  0xef   : > { %v520_v17 = vpack.c.bf16 %v518_v16, %v518_v16  ;;  %v517_v19 = vadd.f32 %v515_v13, %v513_v0  ;;  %v756_v0 = vlaneseq (%p2013_p8) }
  0xf1   : > { %599 = vmatmul.bf16.vlgmr.msra.gmra.mxu3 %v520_v17  ;;  %v519_v20 = vpack.c.bf16 %v517_v19, %v516_v18  ;;  %v757_v18 = vshrl.u32 (%p2013_p8), %v756_v0, 7 }
  0xf3   : > { %594 = vmatmul.bf16.vlgmr.msra.gmra.mxu0 %v519_v20  ;;  %677 = vmatmul.bf16.vlgmr.msra.gmra.mxu1 %v519_v20  ;;  %v758_v20 = vadd.s32 (%p2013_p8), 8, %v757_v18 }
 0x103   : > { %682 = vmatmul.bf16.gmra.mxu1 %v520_v17  ;;  %v760_v17 = vstv (%p2013_p8), %s1193_s4 }
 0x104   : > { %v761_v19 = vadd.s32 (%p2013_p8), %v760_v17, %v757_v18 }
 0x106   : > { %vm764_vm5 = vcmp.ge.s32.totalorder (%p2013_p8), %v761_v19, 0  ;;  %vm767_vm6 = vcmp.lt.s32.totalorder (%p2013_p8), %v761_v19, 16 }
 0x107   : > { %vm770_vm7 = vmand (%p2013_p8), %vm764_vm5, %vm767_vm6 }
 0x170   : > { %v678_v21 = vpop.f32.mrf.mxu1  ;;  %v595_v39 = vpop.f32.mrf.mxu0 }
 0x171   : > { %v679_v22 = vadd.f32 %v678_v21, %v620_v3  ;;  %v596_v50 = vadd.f32 %v595_v39, %v537_v42  ;;  %v762_v21 = vadd.s32 (%p2013_p8), %v760_v17, %v758_v20 }
 0x173   : > { %v1189_v23 = vmul.f32 -1.442695, %v679_v22  ;;  %vm765_vm8 = vcmp.ge.s32.totalorder (%p2013_p8), %v762_v21, 0 }
 0x174   : > { %v2018_v24 = vpop.f32.mrf.mxu3 }
 0x175   : > { %1408 = vpow2.f32 %v1189_v23  ;;  %v601_v13 = vadd.f32 %v2018_v24, %v537_v42 }
 0x178   : > { %v680_v25 = vpop.f32.mrf.mxu1  ;;  %v597_v59 = vpop.f32.mrf.mxu0 }
 0x179   : > { %v681_v26 = vadd.f32 %v680_v25, %v620_v3  ;;  %v598_v2 = vadd.f32 %v597_v59, %v537_v42 }
 0x17b   : > { %v1409_v27 = vpop.eup %1408  ;;  %v1190_v28 = vmul.f32 -1.442695, %v681_v26 }
 0x17c   : > { %v696_v29 = vadd.f32 1.0, %v1409_v27  ;;  %v602_v30 = vpop.f32.mrf.mxu3 }
 0x17d   : > { %1410 = vpow2.f32 %v1190_v28 }
 0x17e   : > { %1412 = vrcp.f32 %v696_v29  ;;  %v710_v40 = vand.u32 2147483648, %v696_v29  ;;  %v708_v44 = vand.u32 2147483647, %v696_v29  ;;  %vm704_vm10 = vweird.f32 %v696_v29 }
 0x180   : > { %v683_v31 = vpop.f32.mrf.mxu1  ;;  %v711_v48 = vor.u32 1.1754944e-38, %v710_v40  ;;  %vm709_vm12 = vcmp.eq.f32.partialorder %v708_v44, 8.507059e+37 }
 0x181   : > { %v684_v32 = vadd.f32 %v683_v31, %v620_v3  ;;  %v759_v3 = vadd.s32 (%p2013_p8), 16, %v757_v18 }
 0x183   : > { %v1411_v33 = vpop.eup %1410  ;;  %v1191_v34 = vmul.f32 -1.442695, %v684_v32  ;;  %v763_v22 = vadd.s32 (%p2013_p8), %v760_v17, %v759_v3 }
 0x184   : > { %v1413_v35 = vpop.eup %1412  ;;  %v697_v36 = vadd.f32 1.0, %v1411_v33 }
 0x185   : > { %v700_v37 = vmul.f32 %v1413_v35, %v696_v29  ;;  %1414 = vpow2.f32 %v1191_v34  ;;  %vm705_vm9 = vweird.f32 %v1413_v35 }
 0x186   : > { %1416 = vrcp.f32 %v697_v36  ;;  %vm706_vm11 = vmor %vm704_vm10, %vm705_vm9  ;;  %v725_v56 = vand.u32 2147483648, %v697_v36  ;;  %v723_v58 = vand.u32 2147483647, %v697_v36  ;;  %vm719_vm14 = vweird.f32 %v697_v36 }
 0x187   : > { %v701_v38 = vsub.f32 1.0, %v700_v37  ;;  %vm768_vm9 = vcmp.lt.s32.totalorder (%p2013_p8), %v762_v21, 16  ;;  %vm766_vm10 = vcmp.ge.s32.totalorder (%p2013_p8), %v763_v22, 0 }
 0x188   : > { %v685_v41 = vpop.f32.mrf.mxu1  ;;  %v726_v63 = vor.u32 1.1754944e-38, %v725_v56  ;;  %vm724_vm0 = vcmp.eq.f32.partialorder %v723_v58, 8.507059e+37 }
 0x189   : > { %v702_v43 = vmul.f32 %v1413_v35, %v701_v38 }
 0x18b   : > { %v1415_v45 = vpop.eup %1414  ;;  %v703_v46 = vadd.f32 %v1413_v35, %v702_v43 }
 0x18c   : > { %v1417_v47 = vpop.eup %1416  ;;  %v698_v49 = vadd.f32 1.0, %v1415_v45 }
 0x18d   : > { %v707_v51 = vsel %vm706_vm11, %v1413_v35, %v703_v46  ;;  %v715_v52 = vmul.f32 %v1417_v47, %v697_v36  ;;  %vm720_vm13 = vweird.f32 %v1417_v47  ;;  %vm771_vm11 = vmand (%p2013_p8), %vm765_vm8, %vm768_vm9 }
 0x18e   : > { %v712_v53 = vsel %vm709_vm12, %v711_v48, %v707_v51  ;;  %1418 = vrcp.f32 %v698_v49  ;;  %vm721_vm15 = vmor %vm719_vm14, %vm720_vm13  ;;  %v740_v9 = vand.u32 2147483648, %v698_v49  ;;  %v738_v11 = vand.u32 2147483647, %v698_v49 }
 0x18f   : > { %v744_v54 = vmul.f32 %v712_v53, %v596_v50  ;;  %v716_v55 = vsub.f32 1.0, %v715_v52  ;;  %vm734_vm2 = vweird.f32 %v698_v49  ;;  %vm769_vm12 = vcmp.lt.s32.totalorder (%p2013_p8), %v763_v22, 16 }
 0x190   : > { %v741_v1 = vor.u32 1.1754944e-38, %v740_v9  ;;  %vm739_vm4 = vcmp.eq.f32.partialorder %v738_v11, 8.507059e+37  ;;  %vm772_vm13 = vmand (%p2013_p8), %vm766_vm10, %vm769_vm12 }
 0x191   : > { %v717_v57 = vmul.f32 %v1417_v47, %v716_v55  ;;  %v779_v23 = vsel (%p2013_p8), %vm770_vm7, %v744_v54, 0.0 }
 0x192   : > { %782 = vst [vmem:[#allocation2] sm:$0xff] (%p2013_p8), %v779_v23 }
 0x193   : > { %v718_v60 = vadd.f32 %v1417_v47, %v717_v57 }
 0x194   : > { %v1419_v62 = vpop.eup %1418 }
 0x195   : > { %v722_v4 = vsel %vm721_vm15, %v1417_v47, %v718_v60  ;;  %v730_v5 = vmul.f32 %v1419_v62, %v698_v49  ;;  %vm735_vm1 = vweird.f32 %v1419_v62 }
 0x196   : > { %v727_v6 = vsel %vm724_vm0, %v726_v63, %v722_v4  ;;  %vm736_vm3 = vmor %vm734_vm2, %vm735_vm1 }
 0x197   : > { %v745_v7 = vmul.f32 %v727_v6, %v598_v2  ;;  %v731_v8 = vsub.f32 1.0, %v730_v5 }
 0x199   : > { %v732_v10 = vmul.f32 %v1419_v62, %v731_v8  ;;  %v780_v24 = vsel (%p2013_p8), %vm771_vm11, %v745_v7, 0.0 }
 0x19a   : > { %783 = vst [vmem:[#allocation2 + $0x8] sm:$0xff] (%p2013_p8), %v780_v24 }
 0x19b   : > { %v733_v12 = vadd.f32 %v1419_v62, %v732_v10  ;;  %754 = sbr.rel (!%p2013_p8) target bundleno = 419 (0x1a3), region = 80 }
 0x19d   : > { %v737_v14 = vsel %vm736_vm3, %v1419_v62, %v733_v12 }
 0x19e   : > { %v742_v15 = vsel %vm739_vm4, %v741_v1, %v737_v14 }
 0x19f   : > { %v746_v16 = vmul.f32 %v742_v15, %v601_v13 }
 0x1a1   : > { %v781_v25 = vsel %vm772_vm13, %v746_v16, 0.0 }
 0x1a2   : > { %784 = vst [vmem:[#allocation2 + $0x10] sm:$0xff] %v781_v25 }
 0x1a3 PF: > { %787 = sbr.rel (%p2013_p8) target bundleno = 427 (0x1ab), region = 84 }
 0x1a8   : > { %788 = vst [vmem:[#allocation2] sm:$0xff] %v744_v54 }
 0x1a9   : > { %789 = vst [vmem:[#allocation2 + $0x8] sm:$0xff] %v745_v7 }
 0x1aa   : > { %790 = vst [vmem:[#allocation2 + $0x10] sm:$0xff] %v746_v16 }
 0x1ab PF: > { %v1255_v26 = vld [vmem:[#allocation14 + $0x38] sm:$0xff]  ;;  %v1254_v27 = vld [vmem:[#allocation14 + $0x30] sm:$0xff]  ;;  %v1253_v41 = vld [vmem:[#allocation14 + $0x28] sm:$0xff]  ;;  %v820_v58 = vperm.slane %v1999_v61, 4  ;;  %v822_v60 = vperm.slane %v1999_v61, 5  ;;  %s1228_s3 = sshll.u32 %s1736_s28, 1 }
 0x1ac   : > { %910 = vmatpush.bf16.msra.mxu2 %v1255_v26  ;;  %v791_v28 = vld [vmem:[#allocation12] sm:$0x7f]  ;;  %v1252_v50 = vld [vmem:[#allocation14 + $0x20] sm:$0xff]  ;;  %v1250_v62 = vld [vmem:[#allocation14 + $0x10] sm:$0xff]  ;;  %s935_s2 = sadd.s32 %s1732_s27, %s1228_s3  ;;  %v861_v19 = vperm.slane %v1999_v61, 6  ;;  %s939_s19 = sshll.u32 %s2024_s10, 4  ;;  %s940_s19 = int_to_ptr.vmem [resolvable:$true] %s939_s19 }
 0x1ad   : > { %v793_v30 = vperm.slane %v791_v28, 0  ;;  %v797_v32 = vperm.slane %v791_v28, 1  ;;  %v801_v34 = vperm.slane %v791_v28, 2  ;;  %v805_v36 = vperm.slane %v791_v28, 3  ;;  %v1251_v56 = vld [vmem:[#allocation14 + $0x18] sm:$0xff]  ;;  %v1249_v4 = vld [vmem:[#allocation14 + $0x8] sm:$0xff] }
 0x1ae   : > { %v809_v40 = vperm.slane %v791_v28, 4  ;;  %v813_v45 = vperm.slane %v791_v28, 5  ;;  %v817_v49 = vperm.slane %v791_v28, 6  ;;  %v1248_v6 = vld [vmem:[#allocation14] sm:$0xff]  ;;  %s1229_s16 = sshll.u32 %s935_s2, 3  ;;  %s925_s11 = scalar_lea.sflag [#allocation5], %s1948_s5 }
 0x1af   : > { %s937_s20 = scalar_lea.hbm %s2087_s7, %s1229_s16  ;;  %s1654_s14 = scalar_lea.hbm %s2087_s7, 32 }
 0x1b0   : > { %v804_v35 = vld [vmem:[#allocation2 + $0x8] sm:$0xff]  ;;  %911 = vmatpush.bf16.msra.mxu2 %v1254_v27  ;;  %s941_s21 = sshll.u32 %s937_s20, 4  ;;  %s942_s21 = int_to_ptr.hbm [resolvable:$true] %s941_s21 }
 0x1b1   : > { %v808_v42 = vld [vmem:[#allocation2 + $0x9] sm:$0xff]  ;;  %v806_v44 = vmul.f32 %v805_v36, %v804_v35  ;;  %s1648_s15 = sshra.s32 %s942_s21, 4  ;;  %s1649_s15 = int_to_ptr.hbm [resolvable:$true] %s1648_s15 }
 0x1b2   : > { %v792_v29 = vld [vmem:[#allocation2 + $0x5] sm:$0xff]  ;;  %v810_v48 = vmul.f32 %v809_v40, %v808_v42  ;;  %s1650_s28 = scalar_lea.hbm %s1649_s15, 8  ;;  %p1655_p12 = scmp.lt.s32.totalorder %s1649_s15, %s2087_s7 }
 0x1b3   : > { %v796_v31 = vld [vmem:[#allocation2 + $0x6] sm:$0xff]  ;;  %v794_v37 = vmul.f32 %v793_v30, %v792_v29  ;;  %p1651_p9 = scmp.ne.s32.totalorder %s1649_s15, %s1650_s28  ;;  %p1656_p13 = scmp.lt.s32.totalorder %s1654_s14, %s1650_s28 }
 0x1b4   : > { %v800_v33 = vld [vmem:[#allocation2 + $0x7] sm:$0xff]  ;;  %v798_v38 = vmul.f32 %v797_v32, %v796_v31  ;;  %912 = vmatpush.bf16.msra.mxu2 %v1253_v41 }
 0x1b5   : > { %v802_v39 = vmul.f32 %v801_v34, %v800_v33  ;;  %v812_v46 = vld [vmem:[#allocation2 + $0xa] sm:$0xff]  ;;  %p1652_p10 = pnand %p1651_p9, %p1909_p2  ;;  %p1657_p0 = por %p1656_p13, %p1655_p12 }
 0x1b6   : > { %v799_v43 = vadd.f32 %v798_v38, %v794_v37  ;;  %v816_v51 = vld [vmem:[#allocation2 + $0xb] sm:$0xff]  ;;  %v814_v53 = vmul.f32 %v813_v45, %v812_v46 }
 0x1b7   : > { %v818_v55 = vmul.f32 %v817_v49, %v816_v51  ;;  %p1653_p11 = pneg %p1652_p10 }
 0x1b8   : > { %v803_v47 = vadd.f32 %v802_v39, %v799_v43  ;;  %913 = vmatpush.bf16.msra.mxu2 %v1252_v50 }
 0x1b9   : > { %p1658_p5 = pnand %p1657_p0, %p1653_p11 }
 0x1ba   : > { %v807_v52 = vadd.f32 %v806_v44, %v803_v47 }
 0x1bc   : > { %v811_v54 = vadd.f32 %v810_v48, %v807_v52  ;;  %914 = vmatpush.bf16.msra.mxu2 %v1251_v56 }
 0x1be   : > { %v815_v57 = vadd.f32 %v814_v53, %v811_v54 }
 0x1c0   : > { %v819_v59 = vadd.f32 %v818_v55, %v815_v57  ;;  %915 = vmatpush.bf16.msra.mxu2 %v1250_v62 }
 0x1c2   : > { %v821_v63 = vmul.f32 %v820_v58, %v819_v59 }
 0x1c4   : > { %v823_v2 = vadd.f32 %v822_v60, %v821_v63  ;;  %916 = vmatpush.bf16.msra.mxu2 %v1249_v4 }
 0x1c6   : > { %v1194_v5 = vmul.f32 -1.442695, %v823_v2 }
 0x1c8   : > { %1420 = vpow2.f32 %v1194_v5  ;;  %917 = vmatpush.bf16.msra.mxu2 %v1248_v6 }
 0x1ce   : > { %v1421_v7 = vpop.eup %1420 }
 0x1cf   : > { %v827_v8 = vadd.f32 1.0, %v1421_v7 }
 0x1d1   : > { %1422 = vrcp.f32 %v827_v8  ;;  %v839_v11 = vand.u32 2147483648, %v827_v8  ;;  %vm833_vm14 = vweird.f32 %v827_v8  ;;  %v837_v1 = vand.u32 2147483647, %v827_v8 }
 0x1d3   : > { %v840_v14 = vor.u32 1.1754944e-38, %v839_v11  ;;  %vm838_vm1 = vcmp.eq.f32.partialorder %v837_v1, 8.507059e+37 }
 0x1d7   : > { %v1423_v9 = vpop.eup %1422 }
 0x1d8   : > { %v829_v10 = vmul.f32 %v1423_v9, %v827_v8  ;;  %vm834_vm15 = vweird.f32 %v1423_v9 }
 0x1d9   : > { %vm835_vm0 = vmor %vm833_vm14, %vm834_vm15 }
 0x1da   : > { %v830_v12 = vsub.f32 1.0, %v829_v10 }
 0x1dc   : > { %v831_v13 = vmul.f32 %v1423_v9, %v830_v12 }
 0x1de   : > { %v832_v15 = vadd.f32 %v1423_v9, %v831_v13 }
 0x1e0   : > { %v836_v16 = vsel %vm835_vm0, %v1423_v9, %v832_v15 }
 0x1e1   : > { %v841_v0 = vsel %vm838_vm1, %v840_v14, %v836_v16 }
 0x1e2   : > { %v843_v17 = vmul.f32 %v841_v0, %v823_v2 }
 0x1e4   : > { %v844_v18 = vpack.c.bf16 %v843_v17, %v843_v17 }
 0x1e6   : > { %918 = vmatmul.bf16.vlgmr.msra.gmra.mxu2 %v844_v18 }
 0x269   : > { %v919_v20 = vpop.f32.mrf.mxu2 }
 0x26a   : > { %v920_v3 = vadd.f32 %v919_v20, %v861_v19 }
 0x26c   : > { %923 = vst [vmem:[%s2024_s10] sm:$0xff] %v920_v3 }
 0x26d   : > { %1661 = shalt.err (!%p1658_p5)
}
 0x26e   : > { %1288 = dma.vmem_to_hbm [thread:$0]  (%p1909_p2), %s940_s19, 128, %s942_s21, %s925_s11  }
 0x271   : > { %v921_v61 = vpop.f32.mrf.mxu2 }
 0x272 PF: > { %s2119_s5 = sld [smem:[#allocation22_spill]]  ;;  %p1328_p6 = scmp.ge.s32.totalorder %s1748_s8, 2 }
 0x274   : > { %p1314_p7 = pnand %p1328_p6, %p1915_p4 }
 0x276   : > { %p1315_p1 = pneg %p1314_p7 }
 0x278   : > { %s953_s12 = sand.u32 1, %s2119_s5  }
 0x279   : > { %s954_s9 = scalar_lea.sflag [#allocation5], %s953_s12 }
 0x27a   : > { %1715 = dma.done.wait (%p1315_p1), %s954_s9, 128  }
 0x27b   : > { %1717 = vsyncadd (%p1315_p1), %s954_s9, 4294967168  ;;  %s28_s8 = sadd.s32 1, %s1748_s8   ;;  %s2121_s22 = sld [smem:[#allocation23_spill]] }
 0x27c   : > { %p25_p3 = scmp.ge.s32.totalorder %s28_s8, 6   ;;  %s2122_s26 = sld [smem:[#allocation27_spill]] }
 0x27d   : > { %s2123_s23 = sld [smem:[#allocation24_spill]]  ;;  %s2125_s24 = smov %s1724_s25 }
 0x27e   : > { %s2124_s18 = sld [smem:[#allocation25_spill]]  ;;  %s2127_s27 = smov %s1740_s29 }
 0x27f   : > { %s2128_s28 = smov %s1744_s30 }
 0x280   :  { %27 = sbr.rel (!%p25_p3) target bundleno = 18 (0x12), region = 134 }
 0x281   : > { %s2126_s25 = smov %s2121_s22 }
 0x283   : > { %s2129_s29 = smov %s2123_s23 }
 0x284   : > { %s2130_s30 = smov %s2124_s18 }
 0x285   :  { %960 = vsyncpa [#allocation4], 1 }
 0x286   :  { %962 = vsyncpa [#allocation4 + $0x1], 1 }
 0x287   :  { %963 = vsyncpa [#allocation7], 1 }
 0x288   :  { %965 = vsyncpa [#allocation7 + $0x1], 1 }
 0x289   :  { %966 = vsyncpa [#allocation10], 1 }
 0x28a   :  { %967 = vsyncpa [#allocation13], 1 }
 0x28b   :  { %968 = vsyncpa [#allocation5], 1 }
 0x28c   :  { %970 = vsyncpa [#allocation5 + $0x1], 1 }

// kernel: tpu_custom_call.1
= control target key start
LH: loop header
LB: loop body
LE: loop exit
PB: predicated region body
PF: predicated region fallthrough
CT: control target
= control target key end

     0   :  { %s2080_s0 = inlined_call_operand.hbm [shape: f32[2,16,128], index: 0, kind: input, shape index: {}]   ;;  %s2081_s1 = inlined_call_operand.hbm [shape: f32[2,2,16,128], index: 1, kind: input, shape index: {}]   ;;  %s2082_s2 = inlined_call_operand.hbm [shape: f32[8,128], index: 2, kind: input, shape index: {}]   ;;  %s2083_s3 = inlined_call_operand.hbm [shape: bf16[128,128], index: 3, kind: input, shape index: {}]   ;;  %s2084_s4 = inlined_call_operand.hbm [shape: bf16[128,128], index: 4, kind: input, shape index: {}]   ;;  %s2085_s5 = inlined_call_operand.hbm [shape: f32[7,128], index: 5, kind: input, shape index: {}]   ;;  %s2086_s6 = inlined_call_operand.hbm [shape: bf16[128,128], index: 6, kind: input, shape index: {}]   ;;  %s2087_s7 = inlined_call_operand.hbm [shape: f32[2,16,128], index: 7, kind: output, shape index: {}]  }
   0x1   :  { %2093 = sst [smem:[#allocation28_spill]] %s2080_s0 }
   0x2   :  { %2094 = sst [smem:[#allocation29_spill]] %s2082_s2 }
   0x3   :  { %2095 = sst [smem:[#allocation30_spill]] %s2083_s3 }
   0x4   :  { %2096 = sst [smem:[#allocation31_spill]] %s2084_s4 }
   0x5   :  { %2097 = sst [smem:[#allocation32_spill]] %s2085_s5 }
   0x6   :  { %2098 = sst [smem:[#allocation33_spill]] %s2086_s6 }
   0x7   :  { %12 = vsyncpa [#allocation4], 0 }
   0x8   :  { %14 = vsyncpa [#allocation4 + $0x1], 0 }
   0x9   :  { %15 = vsyncpa [#allocation7], 0 }
   0xa   :  { %17 = vsyncpa [#allocation7 + $0x1], 0 }
   0xb   :  { %18 = vsyncpa [#allocation10], 0 }
   0xc   :  { %19 = vsyncpa [#allocation13], 0 }
   0xd   :  { %20 = vsyncpa [#allocation5], 0 }
   0xe   :  { %22 = vsyncpa [#allocation5 + $0x1], 0  ;;  %s1799_s24 = smov 0   ;;  %s1801_s25 = smov 0  }
   0xf   :  { %s1803_s26 = smov 0   ;;  %s1805_s27 = smov 0  }
  0x10   :  { %s1807_s28 = smov 0   ;;  %s1809_s29 = smov 0  }
  0x11   :  { %s1811_s30 = smov 0   ;;  %s1813_s8 = smov 0  }
  0x12 LB: > { %2099 = sst [smem:[#allocation22_spill]] %s1720_s24  ;;  %s1840_s9 = sadd.s32 4294967295, %s1748_s8   ;;  %s1748_s8 = sphi %s1813_s8, %s28_s8   ;;  %s1744_s30 = sphi %s1811_s30, %s2130_s30   ;;  %s1740_s29 = sphi %s1809_s29, %s2129_s29   ;;  %s1736_s28 = sphi %s1807_s28, %s2128_s28   ;;  %s1732_s27 = sphi %s1805_s27, %s2127_s27   ;;  %s1728_s26 = sphi %s1803_s26, %s2122_s26   ;;  %s1724_s25 = sphi %s1801_s25, %s2126_s25   ;;  %s1720_s24 = sphi %s1799_s24, %s2125_s24  }
  0x13   : > { %2100 = sst [smem:[#allocation23_spill]] %s1728_s26  ;;  %p1102_p0 = scmp.ge.s32.totalorder %s1748_s8, 1 }
  0x14   : > { %p63_p1 = scmp.eq.s32.totalorder %s1840_s9, 0  ;;  %p234_p2 = scmp.lt.s32.totalorder %s1748_s8, 5 }
  0x15   : > { %s2101_s2 = sld [smem:[#allocation29_spill]]  ;;  %s1750_s14 = smov [#allocation8]  }
  0x16   : > { %p1848_p3 = pnand %p1102_p0, %p234_p2  ;;  %s248_s15 = sshll.u32 %s1750_s14, 4  ;;  %s249_s15 = int_to_ptr.vmem [resolvable:$true] %s248_s15 }
  0x17   : > { %s2103_s3 = sld [smem:[#allocation30_spill]]  ;;  %s1751_s20 = smov [#allocation9]  }
  0x18   : > { %p1290_p4 = pneg %p1848_p3  ;;  %s259_s21 = sshll.u32 %s1751_s20, 4  ;;  %s260_s21 = int_to_ptr.vmem [resolvable:$true] %s259_s21 }
  0x19   : > { %s1752_s22 = smov 64   ;;  %s1753_s23 = smov 4  }
  0x1a   : > { %p1859_p5 = pnand %p1290_p4, %p63_p1  ;;  %s2105_s5 = sld [smem:[#allocation32_spill]] }
  0x1b   : > { %s246_s12 = sshll.u32 %s2101_s2, 4  ;;  %s1754_s16 = smov [#allocation12]   ;;  %s247_s12 = int_to_ptr.hbm [resolvable:$true] %s246_s12 }
  0x1c   : > { %1293 = dma.hbm_to_vmem [thread:$0]  (!%p1859_p5), %s247_s12, 128, %s249_s15, [#allocation7]  }
  0x1d   : > { %s257_s18 = sshll.u32 %s2103_s3, 4  ;;  %s288_s17 = sshll.u32 %s1754_s16, 4  ;;  %s258_s18 = int_to_ptr.hbm [resolvable:$true] %s257_s18  ;;  %s289_s17 = int_to_ptr.vmem [resolvable:$true] %s288_s17 }
  0x1e   : > { %1296 = dma.hbm_to_vmem [thread:$0]  (!%p1859_p5), %s258_s18, 1024, %s260_s21, [#allocation10], %s1752_s22, %s1752_s22, %s1753_s23  }
  0x1f   : > { %s2106_s4 = sld [smem:[#allocation31_spill]]  ;;  %s1755_s15 = smov [#allocation11]  }
  0x20   : > { %s286_s14 = sshll.u32 %s2105_s5, 4  ;;  %s273_s18 = sshll.u32 %s1755_s15, 4  ;;  %s287_s14 = int_to_ptr.hbm [resolvable:$true] %s286_s14  ;;  %s274_s18 = int_to_ptr.vmem [resolvable:$true] %s273_s18 }
  0x21   : > { %1302 = dma.hbm_to_vmem [thread:$0]  (!%p1859_p5), %s287_s14, 128, %s289_s17, [#allocation13]  }
  0x22   : > { %s2107_s6 = sld [smem:[#allocation33_spill]]  ;;  %s1756_s2 = smov [#allocation14]  }
  0x23   : > { %s299_s14 = sshll.u32 %s1756_s2, 4  ;;  %s1101_s16 = sadd.s32 4294967294, %s1748_s8   ;;  %s300_s14 = int_to_ptr.vmem [resolvable:$true] %s299_s14 }
  0x24   : > { %s37_s17 = sadd.s32 1, %s1740_s29  ;;  %s40_s20 = sadd.s32 1, %s1744_s30 }
  0x25   : > { %s271_s12 = sshll.u32 %s2106_s4, 4  ;;  %p38_p6 = scmp.ge.s32.totalorder %s37_s17, 2  ;;  %s272_s12 = int_to_ptr.hbm [resolvable:$true] %s271_s12 }
  0x26   : > { %1299 = dma.hbm_to_vmem [thread:$0]  (!%p1859_p5), %s272_s12, 1024, %s274_s18, [#allocation10], %s1752_s22, %s1752_s22, %s1753_s23  }
  0x27   : > { %s49_s15 = sadd.s32 1, %s1728_s26  ;;  %p56_p7 = scmp.ne.s32.totalorder %s1728_s26, %s1724_s25 }
  0x28   : > { %s297_s11 = sshll.u32 %s2107_s6, 4  ;;  %p57_p8 = scmp.eq.s32.totalorder %s1748_s8, 0  ;;  %s298_s11 = int_to_ptr.hbm [resolvable:$true] %s297_s11 }
  0x29   : > { %1305 = dma.hbm_to_vmem [thread:$0]  (!%p1859_p5), %s298_s11, 1024, %s300_s14, [#allocation13], %s1752_s22, %s1752_s22, %s1753_s23  }
  0x2a   : > { %s2132_s17 = smov (%p38_p6, %s37_s17), 0  ;;  %s2134_s20 = smov (!%p38_p6, %s40_s20), %s1744_s30 }
  0x2b   : > { %2108 = sst [smem:[#allocation24_spill]] %s2132_s17  ;;  %s45_s12 = ssub.s32 %s1740_s29, %s2132_s17 }
  0x2c   : > { %p1894_p9 = por %p57_p8, %p56_p7  ;;  %p42_p10 = scmp.ge.s32.totalorder %s2134_s20, 2 }
  0x2d   : > { %p62_p11 = scmp.ne.s32.totalorder %s1724_s25, %s1720_s24  ;;  %p221_p12 = scmp.eq.s32.totalorder %s1840_s9, 3 }
  0x2e   : > { %p227_p13 = scmp.eq.s32.totalorder %s1101_s16, 3  ;;  %s2136_s20 = smov (%p42_p10, %s2134_s20), 0 }
  0x2f   : > { %2110 = sst [smem:[#allocation25_spill]] %s2136_s20  ;;  %p1905_p0 = por %p63_p1, %p62_p11 }
  0x30   : > { %p1909_p2 = por %p221_p12, %p56_p7  ;;  %s44_s18 = ssub.s32 %s1744_s30, %s2136_s20 }
  0x31   : > { %p1915_p4 = por %p227_p13, %p62_p11  ;;  %s46_s10 = sor.u32 %s45_s12, %s44_s18 }
  0x32   : > { %p1322_p5 = scmp.lt.s32.totalorder %s1748_s8, 4  ;;  %p47_p6 = scmp.eq.s32.totalorder %s46_s10, 0 }
  0x33   : > { %s2113_s21 = scalar_select %p1915_p4, 1, 0 }
  0x34   : > { %s313_s11 = sand.u32 1, %s1728_s26   ;;  %s1110_s16 = sshll.u32 %s1744_s30, 1 }
  0x35   : > { %2114 = sst [smem:[#allocation26_spill]] %s2113_s21  ;;  %s1109_s2 = sshll.u32 %s313_s11, 3 }
  0x36   : > { %s1922_s14 = scalar_select %p47_p6, %s1728_s26, %s49_s15  }
  0x37   : > { %s321_s3 = sadd.s32 %s1740_s29, %s1110_s16  ;;  %s317_s4 = scalar_lea.vmem [#allocation3], %s1109_s2 }
  0x38   : > { %2115 = sst [smem:[#allocation27_spill]] %s1922_s14  ;;  %s327_s5 = sshll.u32 %s317_s4, 4  ;;  %s328_s5 = int_to_ptr.vmem [resolvable:$true] %s327_s5 }
  0x39   : > { %s1111_s6 = sshll.u32 %s321_s3, 3  ;;  %s2116_s0 = sld [smem:[#allocation28_spill]] }
  0x3a   : > { %p1931_p7 = pnand %p1322_p5, %p1894_p9  ;;  %s1112_s18 = sshll.u32 %s313_s11, 4 }
  0x3b   : > { %s314_s10 = scalar_lea.sflag [#allocation4], %s313_s11  ;;  %s1113_s4 = sshll.u32 %s1740_s29, 1 }
  0x3c   : > { %s338_s3 = scalar_lea.vmem [#allocation6], %s1112_s18  ;;  %s334_s16 = sand.u32 1, %s1748_s8  }
  0x3d   : > { %s348_s2 = sshll.u32 %s338_s3, 4  ;;  %s1114_s17 = sshll.u32 %s1744_s30, 2  ;;  %s349_s2 = int_to_ptr.vmem [resolvable:$true] %s348_s2 }
  0x3e   : > { %s1757_s24 = smov 128   ;;  %s1758_s11 = smov 8  }
  0x3f   : > { %s323_s21 = scalar_lea.hbm %s2116_s0, %s1111_s6  ;;  %s343_s6 = sadd.s32 %s1114_s17, %s1113_s4 }
  0x40   : > { %s325_s15 = sshll.u32 %s323_s21, 4  ;;  %s1115_s20 = sshll.u32 %s343_s6, 3  ;;  %s326_s15 = int_to_ptr.hbm [resolvable:$true] %s325_s15 }
  0x41   : > { %1309 = dma.hbm_to_vmem [thread:$0]  (!%p1931_p7), %s326_s15, 128, %s328_s5, %s314_s10  }
  0x42   : > { %s345_s14 = scalar_lea.hbm %s2081_s1, %s1115_s20  ;;  %s335_s21 = scalar_lea.sflag [#allocation7], %s334_s16 }
  0x43   : > { %s346_s26 = sshll.u32 %s345_s14, 4  ;;  %360 = sbr.rel (%p1848_p3) target bundleno = 626 (0x272), region = 48  ;;  %s347_s26 = int_to_ptr.hbm [resolvable:$true] %s346_s26 }
  0x44   : > { %1312 = dma.hbm_to_vmem [thread:$0]  (!%p1931_p7), %s347_s26, 256, %s349_s2, %s335_s21, %s1757_s24, %s1757_s24, %s1758_s11  }
  0x45   : > { %s1948_s5 = sand.u32 (!%p1848_p3), 1, %s1724_s25  }
  0x46   : > { %s1117_s15 = sshll.u32 (!%p1848_p3), %s1948_s5, 3  ;;  %s363_s0 = scalar_lea.sflag (!%p1848_p3), [#allocation4], %s1948_s5 }
  0x47   : > { %s366_s14 = scalar_lea.vmem (!%p1848_p3), [#allocation3], %s1117_s15 }
  0x48   : > { %1695 = dma.done.wait (%p1905_p0), %s363_s0, 128  }
  0x49   : > { %1697 = vsyncadd (%p1905_p0), %s363_s0, 4294967168  ;;  %s372_s24 = sand.u32 1, %s1840_s9   ;;  %s1118_s26 = sshll.u32 %s1948_s5, 4 }
  0x4a   : > { %s373_s13 = scalar_lea.sflag [#allocation7], %s372_s24  ;;  %s376_s12 = scalar_lea.vmem [#allocation6], %s1118_s26 }
  0x4b   : > { %1699 = dma.done.wait (%p1905_p0), %s373_s13, 256  }
  0x4c   : > { %1701 = vsyncadd (%p1905_p0), %s373_s13, 4294967040 }
  0x4d   : > { %1703 = dma.done.wait (%p63_p1), [#allocation7], 128  }
  0x4e   : > { %1705 = vsyncadd (%p63_p1), [#allocation7], 4294967168 }
  0x4f   : > { %1707 = dma.done.wait (%p63_p1), [#allocation10], 2048  }
  0x50   : > { %1709 = vsyncadd (%p63_p1), [#allocation10], 4294965248 }
  0x51   : > { %1711 = dma.done.wait (%p63_p1), [#allocation13], 1152  }
  0x52   : > { %1713 = vsyncadd (%p63_p1), [#allocation13], 4294966144  ;;  %v1976_v0 = vld [vmem:[%s376_s12 + $0x8] sm:$0xff]  ;;  %v1978_v1 = vld [vmem:[%s376_s12] sm:$0xff]  ;;  %s2009_s9 = sshll.u32 %s1732_s27, 3  ;;  %s2024_s10 = scalar_lea.vmem [#allocation15], %s1117_s15 }
  0x53   : > { %446 = vadd.xlane.f32.xlu2 %v1976_v0  ;;  %442 = vadd.xlane.f32.xlu0 %v1978_v1  ;;  %v451_v2 = vmul.f32 %v1978_v1, %v1978_v1  ;;  %v1984_v3 = vld [vmem:[%s366_s14] sm:$0xff]  ;;  %v453_v4 = vmul.f32 %v1976_v0, %v1976_v0  ;;  %v1239_v6 = vld [vmem:[#allocation9 + $0x38] sm:$0xff]  ;;  %v1236_v12 = vld [vmem:[#allocation9 + $0x20] sm:$0xff]  ;;  %s749_s22 = sadd.s32 11, %s2009_s9  ;;  %p748_p1 = scmp.lt.s32.totalorder %s2009_s9, 3 }
  0x54   : > { %v452_v5 = vmul.f32 %v1984_v3, %v1984_v3  ;;  %1256 = vmatpush.bf16.msra.mxu3 %v1239_v6  ;;  %586 = vmatpush.bf16.msra.mxu0 %v1239_v6  ;;  %v1247_v7 = vld [vmem:[#allocation11 + $0x38] sm:$0xff]  ;;  %v1238_v8 = vld [vmem:[#allocation9 + $0x30] sm:$0xff]  ;;  %v1237_v10 = vld [vmem:[#allocation9 + $0x28] sm:$0xff]  ;;  %p750_p3 = scmp.gt.s32.totalorder %s749_s22, 16 }
  0x55   : > { %454 = vadd.xlane.f32.xlu1 %v451_v2  ;;  %669 = vmatpush.bf16.msra.mxu1 %v1247_v7  ;;  %v1246_v9 = vld [vmem:[#allocation11 + $0x30] sm:$0xff]  ;;  %v1245_v11 = vld [vmem:[#allocation11 + $0x28] sm:$0xff]  ;;  %v1244_v13 = vld [vmem:[#allocation11 + $0x20] sm:$0xff] }
  0x56   : > { %v1235_v14 = vld [vmem:[#allocation9 + $0x18] sm:$0xff]  ;;  %v1234_v16 = vld [vmem:[#allocation9 + $0x10] sm:$0xff]  ;;  %v1233_v22 = vld [vmem:[#allocation9 + $0x8] sm:$0xff]  ;;  %p2013_p8 = por %p750_p3, %p748_p1 }
  0x57   : > { %v1243_v15 = vld [vmem:[#allocation11 + $0x18] sm:$0xff]  ;;  %v1242_v20 = vld [vmem:[#allocation11 + $0x10] sm:$0xff]  ;;  %v1241_v25 = vld [vmem:[#allocation11 + $0x8] sm:$0xff]  ;;  %s1193_s4 = sadd.s32 (%p2013_p8), 4294967288, %s2009_s9 }
  0x58   : > { %1257 = vmatpush.bf16.msra.mxu3 %v1238_v8  ;;  %587 = vmatpush.bf16.msra.mxu0 %v1238_v8  ;;  %v1232_v27 = vld [vmem:[#allocation9] sm:$0xff]  ;;  %v1999_v61 = vld [vmem:[#allocation8] sm:$0xff] }
  0x59   : > { %670 = vmatpush.bf16.msra.mxu1 %v1246_v9  ;;  %v1240_v30 = vld [vmem:[#allocation11] sm:$0xff]  ;;  %v511_v6 = vperm.slane %v1999_v61, 0 }
  0x5b   : > { %458 = vadd.xlane.f32.xlu2 %v453_v4  ;;  %444 = vadd.xlane.f32.xlu0 %v1984_v3 }
  0x5c   : > { %1258 = vmatpush.bf16.msra.mxu3 %v1237_v10  ;;  %588 = vmatpush.bf16.msra.mxu0 %v1237_v10 }
  0x5d   : > { %456 = vadd.xlane.f32.xlu1 %v452_v5  ;;  %671 = vmatpush.bf16.msra.mxu1 %v1245_v11 }
  0x60   : > { %1259 = vmatpush.bf16.msra.mxu3 %v1236_v12  ;;  %589 = vmatpush.bf16.msra.mxu0 %v1236_v12 }
  0x61   : > { %672 = vmatpush.bf16.msra.mxu1 %v1244_v13  ;;  %v515_v13 = vperm.slane %v1999_v61, 1 }
  0x64   : > { %1260 = vmatpush.bf16.msra.mxu3 %v1235_v14  ;;  %590 = vmatpush.bf16.msra.mxu0 %v1235_v14 }
  0x65   : > { %673 = vmatpush.bf16.msra.mxu1 %v1243_v15 }
  0x68   : > { %1261 = vmatpush.bf16.msra.mxu3 %v1234_v16  ;;  %591 = vmatpush.bf16.msra.mxu0 %v1234_v16 }
  0x69   : > { %674 = vmatpush.bf16.msra.mxu1 %v1242_v20 }
  0x6c   : > { %1262 = vmatpush.bf16.msra.mxu3 %v1233_v22  ;;  %592 = vmatpush.bf16.msra.mxu0 %v1233_v22 }
  0x6d   : > { %675 = vmatpush.bf16.msra.mxu1 %v1241_v25 }
  0x70   : > { %1263 = vmatpush.bf16.msra.mxu3 %v1232_v27  ;;  %593 = vmatpush.bf16.msra.mxu0 %v1232_v27 }
  0x71   : > { %676 = vmatpush.bf16.msra.mxu1 %v1240_v30 }
  0xc6   : > { %v447_v17 = vpop.xlane.xlu2 %446  ;;  %v443_v18 = vpop.xlane.xlu0 %442 }
  0xc7   : > { %v1991_v19 = vmul.f32 0.03125, %v443_v18  ;;  %v1993_v23 = vmul.f32 0.03125, %v447_v17 }
  0xc8   : > { %v455_v21 = vpop.xlane.xlu1 %454 }
  0xc9   : > { %v463_v24 = vmul.f32 %v1991_v19, %v1991_v19  ;;  %v460_v26 = vmul.f32 0.03125, %v455_v21  ;;  %v465_v29 = vmul.f32 %v1993_v23, %v1993_v23  ;;  %v472_v63 = vsub.f32 %v1978_v1, %v1991_v19 }
  0xca   : > { %v474_v5 = vsub.f32 %v1976_v0, %v1993_v23 }
  0xcb   : > { %v466_v28 = vsub.f32 %v460_v26, %v463_v24 }
  0xcd   : > { %v469_v31 = vmax.f32 %v466_v28, 0.0 }
  0xce   : > { %v459_v32 = vpop.xlane.xlu2 %458  ;;  %v445_v33 = vpop.xlane.xlu0 %444 }
  0xcf   : > { %v462_v34 = vmul.f32 0.03125, %v459_v32  ;;  %v449_v35 = vmul.f32 0.03125, %v445_v33  ;;  %v475_v36 = vadd.f32 1e-05, %v469_v31 }
  0xd0   : > { %v457_v37 = vpop.xlane.xlu1 %456 }
  0xd1   : > { %v468_v38 = vsub.f32 %v462_v34, %v465_v29  ;;  %v464_v39 = vmul.f32 %v449_v35, %v449_v35  ;;  %v461_v40 = vmul.f32 0.03125, %v457_v37  ;;  %1402 = vrsqrt.f32 %v475_v36 }
  0xd2   : > { %vm484_vm1 = vweird.f32 %v475_v36  ;;  %v473_v10 = vsub.f32 %v1984_v3, %v449_v35  ;;  %v620_v3 = vperm.slane %v1999_v61, 3 }
  0xd3   : > { %v471_v41 = vmax.f32 %v468_v38, 0.0  ;;  %v467_v42 = vsub.f32 %v461_v40, %v464_v39 }
  0xd5   : > { %v477_v43 = vadd.f32 1e-05, %v471_v41  ;;  %v470_v44 = vmax.f32 %v467_v42, 0.0  ;;  %v537_v42 = vperm.slane %v1999_v61, 2 }
  0xd7   : > { %1404 = vrsqrt.f32 %v477_v43  ;;  %v476_v45 = vadd.f32 1e-05, %v470_v44  ;;  %v1403_v46 = vpop.eup %1402  ;;  %vm504_vm3 = vweird.f32 %v477_v43 }
  0xd8   : > { %v479_v47 = vmul.f32 %v1403_v46, %v475_v36  ;;  %vm485_vm0 = vweird.f32 %v1403_v46 }
  0xd9   : > { %1406 = vrsqrt.f32 %v476_v45  ;;  %vm486_vm2 = vmor %vm484_vm1, %vm485_vm0  ;;  %vm494_vm7 = vweird.f32 %v476_v45 }
  0xda   : > { %v480_v48 = vmul.f32 %v1403_v46, %v479_v47 }
  0xdc   : > { %v481_v50 = vmul.f32 0.5, %v480_v48 }
  0xdd   : > { %v1405_v49 = vpop.eup %1404 }
  0xde   : > { %v499_v51 = vmul.f32 %v1405_v49, %v477_v43  ;;  %v482_v53 = vsub.f32 1.5, %v481_v50  ;;  %vm505_vm4 = vweird.f32 %v1405_v49 }
  0xdf   : > { %v1407_v52 = vpop.eup %1406  ;;  %vm506_vm6 = vmor %vm504_vm3, %vm505_vm4 }
  0xe0   : > { %v500_v54 = vmul.f32 %v1405_v49, %v499_v51  ;;  %v489_v55 = vmul.f32 %v1407_v52, %v476_v45  ;;  %v483_v56 = vmul.f32 %v1403_v46, %v482_v53  ;;  %vm495_vm5 = vweird.f32 %v1407_v52 }
  0xe1   : > { %vm496_vm8 = vmor %vm494_vm7, %vm495_vm5 }
  0xe2   : > { %v501_v57 = vmul.f32 0.5, %v500_v54  ;;  %v490_v58 = vmul.f32 %v1407_v52, %v489_v55  ;;  %v487_v62 = vsel %vm486_vm2, %v1403_v46, %v483_v56 }
  0xe3   : > { %v508_v7 = vmul.f32 %v487_v62, %v472_v63 }
  0xe4   : > { %v502_v59 = vsub.f32 1.5, %v501_v57  ;;  %v491_v60 = vmul.f32 0.5, %v490_v58 }
  0xe5   : > { %v512_v15 = vmul.f32 %v511_v6, %v508_v7 }
  0xe6   : > { %v492_v2 = vsub.f32 1.5, %v491_v60  ;;  %v503_v4 = vmul.f32 %v1405_v49, %v502_v59 }
  0xe7   : > { %v516_v18 = vadd.f32 %v515_v13, %v512_v15 }
  0xe8   : > { %v493_v8 = vmul.f32 %v1407_v52, %v492_v2  ;;  %v507_v9 = vsel %vm506_vm6, %v1405_v49, %v503_v4 }
  0xe9   : > { %v510_v11 = vmul.f32 %v507_v9, %v474_v5 }
  0xea   : > { %v497_v12 = vsel %vm496_vm8, %v1407_v52, %v493_v8 }
  0xeb   : > { %v514_v1 = vmul.f32 %v511_v6, %v510_v11  ;;  %v509_v14 = vmul.f32 %v497_v12, %v473_v10 }
  0xed   : > { %v518_v16 = vadd.f32 %v515_v13, %v514_v1  ;;  %v513_v0 = vmul.f32 %v511_v6, %v509_v14 }
  0xef   : > { %v520_v17 = vpack.c.bf16 %v518_v16, %v518_v16  ;;  %v517_v19 = vadd.f32 %v515_v13, %v513_v0  ;;  %v756_v0 = vlaneseq (%p2013_p8) }
  0xf1   : > { %599 = vmatmul.bf16.vlgmr.msra.gmra.mxu3 %v520_v17  ;;  %v519_v20 = vpack.c.bf16 %v517_v19, %v516_v18  ;;  %v757_v18 = vshrl.u32 (%p2013_p8), %v756_v0, 7 }
  0xf3   : > { %594 = vmatmul.bf16.vlgmr.msra.gmra.mxu0 %v519_v20  ;;  %677 = vmatmul.bf16.vlgmr.msra.gmra.mxu1 %v519_v20  ;;  %v758_v20 = vadd.s32 (%p2013_p8), 8, %v757_v18 }
 0x103   : > { %682 = vmatmul.bf16.gmra.mxu1 %v520_v17  ;;  %v760_v17 = vstv (%p2013_p8), %s1193_s4 }
 0x104   : > { %v761_v19 = vadd.s32 (%p2013_p8), %v760_v17, %v757_v18 }
 0x106   : > { %vm764_vm5 = vcmp.ge.s32.totalorder (%p2013_p8), %v761_v19, 0  ;;  %vm767_vm6 = vcmp.lt.s32.totalorder (%p2013_p8), %v761_v19, 16 }
 0x107   : > { %vm770_vm7 = vmand (%p2013_p8), %vm764_vm5, %vm767_vm6 }
 0x170   : > { %v678_v21 = vpop.f32.mrf.mxu1  ;;  %v595_v39 = vpop.f32.mrf.mxu0 }
 0x171   : > { %v679_v22 = vadd.f32 %v678_v21, %v620_v3  ;;  %v596_v50 = vadd.f32 %v595_v39, %v537_v42  ;;  %v762_v21 = vadd.s32 (%p2013_p8), %v760_v17, %v758_v20 }
 0x173   : > { %v1189_v23 = vmul.f32 -1.442695, %v679_v22  ;;  %vm765_vm8 = vcmp.ge.s32.totalorder (%p2013_p8), %v762_v21, 0 }
 0x174   : > { %v2018_v24 = vpop.f32.mrf.mxu3 }
 0x175   : > { %1408 = vpow2.f32 %v1189_v23  ;;  %v601_v13 = vadd.f32 %v2018_v24, %v537_v42 }
 0x178   : > { %v680_v25 = vpop.f32.mrf.mxu1  ;;  %v597_v59 = vpop.f32.mrf.mxu0 }
 0x179   : > { %v681_v26 = vadd.f32 %v680_v25, %v620_v3  ;;  %v598_v2 = vadd.f32 %v597_v59, %v537_v42 }
 0x17b   : > { %v1409_v27 = vpop.eup %1408  ;;  %v1190_v28 = vmul.f32 -1.442695, %v681_v26 }
 0x17c   : > { %v696_v29 = vadd.f32 1.0, %v1409_v27  ;;  %v602_v30 = vpop.f32.mrf.mxu3 }
 0x17d   : > { %1410 = vpow2.f32 %v1190_v28 }
 0x17e   : > { %1412 = vrcp.f32 %v696_v29  ;;  %v710_v40 = vand.u32 2147483648, %v696_v29  ;;  %v708_v44 = vand.u32 2147483647, %v696_v29  ;;  %vm704_vm10 = vweird.f32 %v696_v29 }
 0x180   : > { %v683_v31 = vpop.f32.mrf.mxu1  ;;  %v711_v48 = vor.u32 1.1754944e-38, %v710_v40  ;;  %vm709_vm12 = vcmp.eq.f32.partialorder %v708_v44, 8.507059e+37 }
 0x181   : > { %v684_v32 = vadd.f32 %v683_v31, %v620_v3  ;;  %v759_v3 = vadd.s32 (%p2013_p8), 16, %v757_v18 }
 0x183   : > { %v1411_v33 = vpop.eup %1410  ;;  %v1191_v34 = vmul.f32 -1.442695, %v684_v32  ;;  %v763_v22 = vadd.s32 (%p2013_p8), %v760_v17, %v759_v3 }
 0x184   : > { %v1413_v35 = vpop.eup %1412  ;;  %v697_v36 = vadd.f32 1.0, %v1411_v33 }
 0x185   : > { %v700_v37 = vmul.f32 %v1413_v35, %v696_v29  ;;  %1414 = vpow2.f32 %v1191_v34  ;;  %vm705_vm9 = vweird.f32 %v1413_v35 }
 0x186   : > { %1416 = vrcp.f32 %v697_v36  ;;  %vm706_vm11 = vmor %vm704_vm10, %vm705_vm9  ;;  %v725_v56 = vand.u32 2147483648, %v697_v36  ;;  %v723_v58 = vand.u32 2147483647, %v697_v36  ;;  %vm719_vm14 = vweird.f32 %v697_v36 }
 0x187   : > { %v701_v38 = vsub.f32 1.0, %v700_v37  ;;  %vm768_vm9 = vcmp.lt.s32.totalorder (%p2013_p8), %v762_v21, 16  ;;  %vm766_vm10 = vcmp.ge.s32.totalorder (%p2013_p8), %v763_v22, 0 }
 0x188   : > { %v685_v41 = vpop.f32.mrf.mxu1  ;;  %v726_v63 = vor.u32 1.1754944e-38, %v725_v56  ;;  %vm724_vm0 = vcmp.eq.f32.partialorder %v723_v58, 8.507059e+37 }
 0x189   : > { %v702_v43 = vmul.f32 %v1413_v35, %v701_v38 }
 0x18b   : > { %v1415_v45 = vpop.eup %1414  ;;  %v703_v46 = vadd.f32 %v1413_v35, %v702_v43 }
 0x18c   : > { %v1417_v47 = vpop.eup %1416  ;;  %v698_v49 = vadd.f32 1.0, %v1415_v45 }
 0x18d   : > { %v707_v51 = vsel %vm706_vm11, %v1413_v35, %v703_v46  ;;  %v715_v52 = vmul.f32 %v1417_v47, %v697_v36  ;;  %vm720_vm13 = vweird.f32 %v1417_v47  ;;  %vm771_vm11 = vmand (%p2013_p8), %vm765_vm8, %vm768_vm9 }
 0x18e   : > { %v712_v53 = vsel %vm709_vm12, %v711_v48, %v707_v51  ;;  %1418 = vrcp.f32 %v698_v49  ;;  %vm721_vm15 = vmor %vm719_vm14, %vm720_vm13  ;;  %v740_v9 = vand.u32 2147483648, %v698_v49  ;;  %v738_v11 = vand.u32 2147483647, %v698_v49 }
 0x18f   : > { %v744_v54 = vmul.f32 %v712_v53, %v596_v50  ;;  %v716_v55 = vsub.f32 1.0, %v715_v52  ;;  %vm734_vm2 = vweird.f32 %v698_v49  ;;  %vm769_vm12 = vcmp.lt.s32.totalorder (%p2013_p8), %v763_v22, 16 }
 0x190   : > { %v741_v1 = vor.u32 1.1754944e-38, %v740_v9  ;;  %vm739_vm4 = vcmp.eq.f32.partialorder %v738_v11, 8.507059e+37  ;;  %vm772_vm13 = vmand (%p2013_p8), %vm766_vm10, %vm769_vm12 }
 0x191   : > { %v717_v57 = vmul.f32 %v1417_v47, %v716_v55  ;;  %v779_v23 = vsel (%p2013_p8), %vm770_vm7, %v744_v54, 0.0 }
 0x192   : > { %782 = vst [vmem:[#allocation2] sm:$0xff] (%p2013_p8), %v779_v23 }
 0x193   : > { %v718_v60 = vadd.f32 %v1417_v47, %v717_v57 }
 0x194   : > { %v1419_v62 = vpop.eup %1418 }
 0x195   : > { %v722_v4 = vsel %vm721_vm15, %v1417_v47, %v718_v60  ;;  %v730_v5 = vmul.f32 %v1419_v62, %v698_v49  ;;  %vm735_vm1 = vweird.f32 %v1419_v62 }
 0x196   : > { %v727_v6 = vsel %vm724_vm0, %v726_v63, %v722_v4  ;;  %vm736_vm3 = vmor %vm734_vm2, %vm735_vm1 }
 0x197   : > { %v745_v7 = vmul.f32 %v727_v6, %v598_v2  ;;  %v731_v8 = vsub.f32 1.0, %v730_v5 }
 0x199   : > { %v732_v10 = vmul.f32 %v1419_v62, %v731_v8  ;;  %v780_v24 = vsel (%p2013_p8), %vm771_vm11, %v745_v7, 0.0 }
 0x19a   : > { %783 = vst [vmem:[#allocation2 + $0x8] sm:$0xff] (%p2013_p8), %v780_v24 }
 0x19b   : > { %v733_v12 = vadd.f32 %v1419_v62, %v732_v10  ;;  %754 = sbr.rel (!%p2013_p8) target bundleno = 419 (0x1a3), region = 80 }
 0x19d   : > { %v737_v14 = vsel %vm736_vm3, %v1419_v62, %v733_v12 }
 0x19e   : > { %v742_v15 = vsel %vm739_vm4, %v741_v1, %v737_v14 }
 0x19f   : > { %v746_v16 = vmul.f32 %v742_v15, %v601_v13 }
 0x1a1   : > { %v781_v25 = vsel %vm772_vm13, %v746_v16, 0.0 }
 0x1a2   : > { %784 = vst [vmem:[#allocation2 + $0x10] sm:$0xff] %v781_v25 }
 0x1a3 PF: > { %787 = sbr.rel (%p2013_p8) target bundleno = 427 (0x1ab), region = 84 }
 0x1a8   : > { %788 = vst [vmem:[#allocation2] sm:$0xff] %v744_v54 }
 0x1a9   : > { %789 = vst [vmem:[#allocation2 + $0x8] sm:$0xff] %v745_v7 }
 0x1aa   : > { %790 = vst [vmem:[#allocation2 + $0x10] sm:$0xff] %v746_v16 }
 0x1ab PF: > { %v1255_v26 = vld [vmem:[#allocation14 + $0x38] sm:$0xff]  ;;  %v1254_v27 = vld [vmem:[#allocation14 + $0x30] sm:$0xff]  ;;  %v1253_v41 = vld [vmem:[#allocation14 + $0x28] sm:$0xff]  ;;  %v820_v58 = vperm.slane %v1999_v61, 4  ;;  %v822_v60 = vperm.slane %v1999_v61, 5  ;;  %s1228_s3 = sshll.u32 %s1736_s28, 1 }
 0x1ac   : > { %910 = vmatpush.bf16.msra.mxu2 %v1255_v26  ;;  %v791_v28 = vld [vmem:[#allocation12] sm:$0x7f]  ;;  %v1252_v50 = vld [vmem:[#allocation14 + $0x20] sm:$0xff]  ;;  %v1250_v62 = vld [vmem:[#allocation14 + $0x10] sm:$0xff]  ;;  %s935_s2 = sadd.s32 %s1732_s27, %s1228_s3  ;;  %v861_v19 = vperm.slane %v1999_v61, 6  ;;  %s939_s19 = sshll.u32 %s2024_s10, 4  ;;  %s940_s19 = int_to_ptr.vmem [resolvable:$true] %s939_s19 }
 0x1ad   : > { %v793_v30 = vperm.slane %v791_v28, 0  ;;  %v797_v32 = vperm.slane %v791_v28, 1  ;;  %v801_v34 = vperm.slane %v791_v28, 2  ;;  %v805_v36 = vperm.slane %v791_v28, 3  ;;  %v1251_v56 = vld [vmem:[#allocation14 + $0x18] sm:$0xff]  ;;  %v1249_v4 = vld [vmem:[#allocation14 + $0x8] sm:$0xff] }
 0x1ae   : > { %v809_v40 = vperm.slane %v791_v28, 4  ;;  %v813_v45 = vperm.slane %v791_v28, 5  ;;  %v817_v49 = vperm.slane %v791_v28, 6  ;;  %v1248_v6 = vld [vmem:[#allocation14] sm:$0xff]  ;;  %s1229_s16 = sshll.u32 %s935_s2, 3  ;;  %s925_s11 = scalar_lea.sflag [#allocation5], %s1948_s5 }
 0x1af   : > { %s937_s20 = scalar_lea.hbm %s2087_s7, %s1229_s16  ;;  %s1654_s14 = scalar_lea.hbm %s2087_s7, 32 }
 0x1b0   : > { %v804_v35 = vld [vmem:[#allocation2 + $0x8] sm:$0xff]  ;;  %911 = vmatpush.bf16.msra.mxu2 %v1254_v27  ;;  %s941_s21 = sshll.u32 %s937_s20, 4  ;;  %s942_s21 = int_to_ptr.hbm [resolvable:$true] %s941_s21 }
 0x1b1   : > { %v808_v42 = vld [vmem:[#allocation2 + $0x9] sm:$0xff]  ;;  %v806_v44 = vmul.f32 %v805_v36, %v804_v35  ;;  %s1648_s15 = sshra.s32 %s942_s21, 4  ;;  %s1649_s15 = int_to_ptr.hbm [resolvable:$true] %s1648_s15 }
 0x1b2   : > { %v792_v29 = vld [vmem:[#allocation2 + $0x5] sm:$0xff]  ;;  %v810_v48 = vmul.f32 %v809_v40, %v808_v42  ;;  %s1650_s28 = scalar_lea.hbm %s1649_s15, 8  ;;  %p1655_p12 = scmp.lt.s32.totalorder %s1649_s15, %s2087_s7 }
 0x1b3   : > { %v796_v31 = vld [vmem:[#allocation2 + $0x6] sm:$0xff]  ;;  %v794_v37 = vmul.f32 %v793_v30, %v792_v29  ;;  %p1651_p9 = scmp.ne.s32.totalorder %s1649_s15, %s1650_s28  ;;  %p1656_p13 = scmp.lt.s32.totalorder %s1654_s14, %s1650_s28 }
 0x1b4   : > { %v800_v33 = vld [vmem:[#allocation2 + $0x7] sm:$0xff]  ;;  %v798_v38 = vmul.f32 %v797_v32, %v796_v31  ;;  %912 = vmatpush.bf16.msra.mxu2 %v1253_v41 }
 0x1b5   : > { %v802_v39 = vmul.f32 %v801_v34, %v800_v33  ;;  %v812_v46 = vld [vmem:[#allocation2 + $0xa] sm:$0xff]  ;;  %p1652_p10 = pnand %p1651_p9, %p1909_p2  ;;  %p1657_p0 = por %p1656_p13, %p1655_p12 }
 0x1b6   : > { %v799_v43 = vadd.f32 %v798_v38, %v794_v37  ;;  %v816_v51 = vld [vmem:[#allocation2 + $0xb] sm:$0xff]  ;;  %v814_v53 = vmul.f32 %v813_v45, %v812_v46 }
 0x1b7   : > { %v818_v55 = vmul.f32 %v817_v49, %v816_v51  ;;  %p1653_p11 = pneg %p1652_p10 }
 0x1b8   : > { %v803_v47 = vadd.f32 %v802_v39, %v799_v43  ;;  %913 = vmatpush.bf16.msra.mxu2 %v1252_v50 }
 0x1b9   : > { %p1658_p5 = pnand %p1657_p0, %p1653_p11 }
 0x1ba   : > { %v807_v52 = vadd.f32 %v806_v44, %v803_v47 }
 0x1bc   : > { %v811_v54 = vadd.f32 %v810_v48, %v807_v52  ;;  %914 = vmatpush.bf16.msra.mxu2 %v1251_v56 }
 0x1be   : > { %v815_v57 = vadd.f32 %v814_v53, %v811_v54 }
 0x1c0   : > { %v819_v59 = vadd.f32 %v818_v55, %v815_v57  ;;  %915 = vmatpush.bf16.msra.mxu2 %v1250_v62 }
 0x1c2   : > { %v821_v63 = vmul.f32 %v820_v58, %v819_v59 }
 0x1c4   : > { %v823_v2 = vadd.f32 %v822_v60, %v821_v63  ;;  %916 = vmatpush.bf16.msra.mxu2 %v1249_v4 }
 0x1c6   : > { %v1194_v5 = vmul.f32 -1.442695, %v823_v2 }
 0x1c8   : > { %1420 = vpow2.f32 %v1194_v5  ;;  %917 = vmatpush.bf16.msra.mxu2 %v1248_v6 }
 0x1ce   : > { %v1421_v7 = vpop.eup %1420 }
 0x1cf   : > { %v827_v8 = vadd.f32 1.0, %v1421_v7 }
 0x1d1   : > { %1422 = vrcp.f32 %v827_v8  ;;  %v839_v11 = vand.u32 2147483648, %v827_v8  ;;  %vm833_vm14 = vweird.f32 %v827_v8  ;;  %v837_v1 = vand.u32 2147483647, %v827_v8 }
 0x1d3   : > { %v840_v14 = vor.u32 1.1754944e-38, %v839_v11  ;;  %vm838_vm1 = vcmp.eq.f32.partialorder %v837_v1, 8.507059e+37 }
 0x1d7   : > { %v1423_v9 = vpop.eup %1422 }
 0x1d8   : > { %v829_v10 = vmul.f32 %v1423_v9, %v827_v8  ;;  %vm834_vm15 = vweird.f32 %v1423_v9 }
 0x1d9   : > { %vm835_vm0 = vmor %vm833_vm14, %vm834_vm15 }
 0x1da   : > { %v830_v12 = vsub.f32 1.0, %v829_v10 }
 0x1dc   : > { %v831_v13 = vmul.f32 %v1423_v9, %v830_v12 }
 0x1de   : > { %v832_v15 = vadd.f32 %v1423_v9, %v831_v13 }
 0x1e0   : > { %v836_v16 = vsel %vm835_vm0, %v1423_v9, %v832_v15 }
 0x1e1   : > { %v841_v0 = vsel %vm838_vm1, %v840_v14, %v836_v16 }
 0x1e2   : > { %v843_v17 = vmul.f32 %v841_v0, %v823_v2 }
 0x1e4   : > { %v844_v18 = vpack.c.bf16 %v843_v17, %v843_v17 }
 0x1e6   : > { %918 = vmatmul.bf16.vlgmr.msra.gmra.mxu2 %v844_v18 }
 0x269   : > { %v919_v20 = vpop.f32.mrf.mxu2 }
 0x26a   : > { %v920_v3 = vadd.f32 %v919_v20, %v861_v19 }
 0x26c   : > { %923 = vst [vmem:[%s2024_s10] sm:$0xff] %v920_v3 }
 0x26d   : > { %1661 = shalt.err (!%p1658_p5)
}
 0x26e   : > { %1288 = dma.vmem_to_hbm [thread:$0]  (%p1909_p2), %s940_s19, 128, %s942_s21, %s925_s11  }
 0x271   : > { %v921_v61 = vpop.f32.mrf.mxu2 }
 0x272 PF: > { %s2119_s5 = sld [smem:[#allocation22_spill]]  ;;  %p1328_p6 = scmp.ge.s32.totalorder %s1748_s8, 2 }
 0x274   : > { %p1314_p7 = pnand %p1328_p6, %p1915_p4 }
 0x276   : > { %p1315_p1 = pneg %p1314_p7 }
 0x278   : > { %s953_s12 = sand.u32 1, %s2119_s5  }
 0x279   : > { %s954_s9 = scalar_lea.sflag [#allocation5], %s953_s12 }
 0x27a   : > { %1715 = dma.done.wait (%p1315_p1), %s954_s9, 128  }
 0x27b   : > { %1717 = vsyncadd (%p1315_p1), %s954_s9, 4294967168  ;;  %s28_s8 = sadd.s32 1, %s1748_s8   ;;  %s2121_s22 = sld [smem:[#allocation23_spill]] }
 0x27c   : > { %p25_p3 = scmp.ge.s32.totalorder %s28_s8, 6   ;;  %s2122_s26 = sld [smem:[#allocation27_spill]] }
 0x27d   : > { %s2123_s23 = sld [smem:[#allocation24_spill]]  ;;  %s2125_s24 = smov %s1724_s25 }
 0x27e   : > { %s2124_s18 = sld [smem:[#allocation25_spill]]  ;;  %s2127_s27 = smov %s1740_s29 }
 0x27f   : > { %s2128_s28 = smov %s1744_s30 }
 0x280   :  { %27 = sbr.rel (!%p25_p3) target bundleno = 18 (0x12), region = 134 }
 0x281   : > { %s2126_s25 = smov %s2121_s22 }
 0x283   : > { %s2129_s29 = smov %s2123_s23 }
 0x284   : > { %s2130_s30 = smov %s2124_s18 }
 0x285   :  { %960 = vsyncpa [#allocation4], 1 }
 0x286   :  { %962 = vsyncpa [#allocation4 + $0x1], 1 }
 0x287   :  { %963 = vsyncpa [#allocation7], 1 }
 0x288   :  { %965 = vsyncpa [#allocation7 + $0x1], 1 }
 0x289   :  { %966 = vsyncpa [#allocation10], 1 }
 0x28a   :  { %967 = vsyncpa [#allocation13], 1 }
 0x28b   :  { %968 = vsyncpa [#allocation5], 1 }
 0x28c   :  { %970 = vsyncpa [#allocation5 + $0x1], 1 }

</bundles_post_ra>
